<compile_context>
chip_gen: v7x
topology: tpu7x:2x2x1
jax: 0.10.0
libtpu: 0.0.40
codegen_flags: <defaults>
</compile_context>

<pallas_src>
import functools

import jax
import jax.numpy as jnp
from jax.experimental import pallas as pl
from jax.experimental.pallas import tpu as pltpu

LN_EPS = 1e-5
NEG_INF = -1e30


def _round_up(x, m):
    return ((x + m - 1) // m) * m


def _layernorm(x, gamma, beta):
    mu = jnp.mean(x, axis=-1, keepdims=True)
    var = jnp.mean((x - mu) ** 2, axis=-1, keepdims=True)
    return (x - mu) * jax.lax.rsqrt(var + LN_EPS) * gamma + beta


# ----------------------------------------------------------------------------
# Kernel 1: fused decoder layer stack.  Grid over layers; x resident in VMEM.
# ----------------------------------------------------------------------------
def decoder_layer_kernel(x_ref, p_ref, mask_ref,
                         wq_ref, bq_ref, wkv_ref, bkv_ref, wc_ref, bc_ref,
                         g1_ref, be1_ref, g2_ref, be2_ref,
                         w1_ref, b1_ref, w2_ref, b2_ref,
                         gf_ref, bf_ref,
                         o_ref, x_sc,
                         *, num_heads, head_dim, head_dim_pad):
    l = pl.program_id(0)

    # Load the embedded tokens into the resident scratch on the first layer.
    @pl.when(l == 0)
    def _():
        x_sc[...] = x_ref[...]

    x = x_sc[...]                                   # (M, Wemb) f32
    x16 = x.astype(jnp.bfloat16)
    p16 = p_ref[...]                                # (N, Pemb_pad) bf16 (pre-cast)
    mask = mask_ref[...]                            # (M, N) f32 additive mask
    ndp = num_heads * head_dim_pad
    scale = 1.0 / (float(head_dim) ** 0.5)          # PyTorch uses the real head dim

    # ---------------- CrossAttention ----------------
    # Full-width Q projection and fused K/V projection (lane-dense K=128 mult).
    q = (jnp.dot(x16, wq_ref[0], preferred_element_type=jnp.float32)
         + bq_ref[0]) * scale
    kv = jnp.dot(p16, wkv_ref[0], preferred_element_type=jnp.float32) + bkv_ref[0]
    q16 = q.astype(jnp.bfloat16)                    # casts hoisted out of head loop
    kv16 = kv.astype(jnp.bfloat16)

    head_outs = []
    for h in range(num_heads):                      # static, small
        c0 = h * head_dim_pad
        qh = q16[:, c0:c0 + head_dim_pad]           # (M, hdp)
        kh = kv16[:, c0:c0 + head_dim_pad]          # (N, hdp)
        vh = kv16[:, ndp + c0:ndp + c0 + head_dim_pad]
        # Scores for ALL batch rows at once; cross-batch entries masked out.
        s = jax.lax.dot_general(qh, kh, (((1,), (1,)), ((), ())),
                                preferred_element_type=jnp.float32)    # (M, N)
        s = s + mask
        s = s - jnp.max(s, axis=-1, keepdims=True)
        e = jnp.exp(s)
        pr = e * pl.reciprocal(jnp.sum(e, axis=-1, keepdims=True), approx=True)
        head_outs.append(jnp.dot(pr.astype(jnp.bfloat16), vh,
                                 preferred_element_type=jnp.float32))  # (M, hdp)
    # Single full-depth contraction with the output projection (no per-head
    # wc matmuls, no per-batch concatenation).
    oh_cat = jnp.concatenate(head_outs, axis=-1).astype(jnp.bfloat16)  # (M, ndp)
    attn = jnp.dot(oh_cat, wc_ref[0], preferred_element_type=jnp.float32) + bc_ref[0]

    y = _layernorm(attn + x, g1_ref[0], be1_ref[0])  # cross-attn residual + LN

    # ---------------- Pre-activation residual MLP ----------------
    # TODO(synk): PreActivationResidualMLPBlock class not provided; assumed
    #             LN -> Linear -> GELU -> Linear -> residual structure.
    h_pre = _layernorm(y, g2_ref[0], be2_ref[0]).astype(jnp.bfloat16)
    h1 = jax.nn.gelu(
        jnp.dot(h_pre, w1_ref[0], preferred_element_type=jnp.float32) + b1_ref[0],
        approximate=True)
    mlp = jnp.dot(h1.astype(jnp.bfloat16), w2_ref[0],
                  preferred_element_type=jnp.float32) + b2_ref[0]
    x_new = y + mlp
    x_sc[...] = x_new

    # ---------------- Final LayerNorm on the last layer ----------------
    @pl.when(l == pl.num_programs(0) - 1)
    def _():
        o_ref[...] = _layernorm(x_new, gf_ref[...], bf_ref[...]).astype(o_ref.dtype)


# ----------------------------------------------------------------------------
# Kernel 2: vocab projection, grid tiled over V ("parallel" -> megacore).
# ----------------------------------------------------------------------------
def vocab_proj_kernel(xn_ref, wp_ref, bp_ref, o_ref):
    o_ref[...] = (jnp.dot(xn_ref[...], wp_ref[...],
                          preferred_element_type=jnp.float32) + bp_ref[...])


# ----------------------------------------------------------------------------
# Parameter construction (deterministic, logical / unpadded PyTorch layout).
# ----------------------------------------------------------------------------
def init_params(key, *, Wemb, Pemb, new_dim, hidden, voc, n_blocks, max_seq=200):
    def rnd(k, shape, scale=0.02):
        return jax.random.normal(k, shape, jnp.float32) * scale

    p = {}
    p["wte"] = rnd(jax.random.fold_in(key, 1), (voc, Wemb))
    p["pos"] = rnd(jax.random.fold_in(key, 2), (max_seq, Wemb))
    blocks = []
    for i in range(n_blocks):
        kblk = jax.random.fold_in(key, 100 + i)
        blocks.append({
            "wq": rnd(jax.random.fold_in(kblk, 0), (Wemb, new_dim)),
            "bq": rnd(jax.random.fold_in(kblk, 1), (new_dim,)),
            "wk": rnd(jax.random.fold_in(kblk, 2), (Pemb, new_dim)),
            "bk": rnd(jax.random.fold_in(kblk, 3), (new_dim,)),
            "wv": rnd(jax.random.fold_in(kblk, 4), (Pemb, new_dim)),
            "bv": rnd(jax.random.fold_in(kblk, 5), (new_dim,)),
            "wc": rnd(jax.random.fold_in(kblk, 6), (new_dim, Wemb)),
            "bc": rnd(jax.random.fold_in(kblk, 7), (Wemb,)),
            "g1": jnp.ones((Wemb,), jnp.float32),
            "be1": jnp.zeros((Wemb,), jnp.float32),
            "g2": jnp.ones((Wemb,), jnp.float32),
            "be2": jnp.zeros((Wemb,), jnp.float32),
            "w1": rnd(jax.random.fold_in(kblk, 8), (Wemb, hidden)),
            "b1": rnd(jax.random.fold_in(kblk, 9), (hidden,)),
            "w2": rnd(jax.random.fold_in(kblk, 10), (hidden, Wemb)),
            "b2": rnd(jax.random.fold_in(kblk, 11), (Wemb,)),
        })
    p["blocks"] = blocks
    p["final"] = {
        "gf": jnp.ones((Wemb,), jnp.float32),
        "bf": jnp.zeros((Wemb,), jnp.float32),
        "wp": rnd(jax.random.fold_in(key, 3), (Wemb, voc)),
        "bp": rnd(jax.random.fold_in(key, 4), (voc,)),
    }
    return p


# ----------------------------------------------------------------------------
# Weight preparation: zero-pad every feature dim (per-head dim, Pemb, MLP
# hidden, vocab) to lane-dense 128 multiples, fuse K/V, stack per-layer
# weights along a leading layer dim, cast matmul weights to bf16.  All padding
# is zeros, so results match the unpadded math (up to bf16 rounding).
# ----------------------------------------------------------------------------
def prepare_kernel_params(params, *, num_heads, vocab_tile=128):
    blocks = params["blocks"]
    Wemb = blocks[0]["wq"].shape[0]
    Pemb = blocks[0]["wk"].shape[0]
    new_dim = blocks[0]["wq"].shape[1]
    hidden = blocks[0]["w1"].shape[1]
    voc = params["final"]["wp"].shape[1]

    hd = new_dim // num_heads
    ndp = _round_up(new_dim, 128)
    assert ndp % num_heads == 0
    hdp = ndp // num_heads
    hidp = _round_up(hidden, 128)
    pemb_pad = _round_up(Pemb, 128)
    voc_pad = _round_up(voc, vocab_tile)
    assert Wemb % 128 == 0, "Wemb must be a multiple of 128"

    def pad_cols_per_head(w):          # (in, H*hd) -> (in, H*hdp)
        i = w.shape[0]
        w3 = w.reshape(i, num_heads, hd)
        return jnp.pad(w3, ((0, 0), (0, 0), (0, hdp - hd))).reshape(i, num_heads * hdp)

    def pad_vec_per_head(b):           # (H*hd,) -> (1, H*hdp)
        b2 = b.reshape(num_heads, hd)
        return jnp.pad(b2, ((0, 0), (0, hdp - hd))).reshape(1, num_heads * hdp)

    def pad_rows_per_head(w):          # (H*hd, out) -> (H*hdp, out)
        o = w.shape[1]
        w3 = w.reshape(num_heads, hd, o)
        return jnp.pad(w3, ((0, 0), (0, hdp - hd), (0, 0))).reshape(num_heads * hdp, o)

    def pad_p_rows(w):                 # (Pemb, X) -> (pemb_pad, X)
        return jnp.pad(w, ((0, pemb_pad - Pemb), (0, 0)))

    stk = lambda xs: jnp.stack(xs, axis=0)
    tobf = lambda x: x.astype(jnp.bfloat16)

    kp = {
        "wq": tobf(stk([pad_cols_per_head(b["wq"]) for b in blocks])),
        "bq": stk([pad_vec_per_head(b["bq"]) for b in blocks]),
        "wkv": tobf(stk([jnp.concatenate(
            [pad_p_rows(pad_cols_per_head(b["wk"])),
             pad_p_rows(pad_cols_per_head(b["wv"]))], axis=1) for b in blocks])),
        "bkv": stk([jnp.concatenate([pad_vec_per_head(b["bk"]),
                                     pad_vec_per_head(b["bv"])], axis=1)
                    for b in blocks]),
        "wc": tobf(stk([pad_rows_per_head(b["wc"]) for b in blocks])),
        "bc": stk([b["bc"].reshape(1, -1) for b in blocks]),
        "g1": stk([b["g1"].reshape(1, -1) for b in blocks]),
        "be1": stk([b["be1"].reshape(1, -1) for b in blocks]),
        "g2": stk([b["g2"].reshape(1, -1) for b in blocks]),
        "be2": stk([b["be2"].reshape(1, -1) for b in blocks]),
        "w1": tobf(stk([jnp.pad(b["w1"], ((0, 0), (0, hidp - hidden)))
                        for b in blocks])),
        "b1": stk([jnp.pad(b["b1"], (0, hidp - hidden)).reshape(1, -1)
                   for b in blocks]),
        "w2": tobf(stk([jnp.pad(b["w2"], ((0, hidp - hidden), (0, 0)))
                        for b in blocks])),
        "b2": stk([b["b2"].reshape(1, -1) for b in blocks]),
        "gf": params["final"]["gf"].reshape(1, -1),
        "bf": params["final"]["bf"].reshape(1, -1),
        "wp": tobf(jnp.pad(params["final"]["wp"], ((0, 0), (0, voc_pad - voc)))),
        "bp": jnp.pad(params["final"]["bp"], (0, voc_pad - voc)).reshape(1, -1),
    }
    meta = {"head_dim": hd, "head_dim_pad": hdp, "ndp": ndp, "hidp": hidp,
            "pemb_pad": pemb_pad, "voc_pad": voc_pad}
    return kp, meta


def _nbytes(a):
    return int(a.size) * a.dtype.itemsize


# ----------------------------------------------------------------------------
# Forward wrapper.
# ----------------------------------------------------------------------------
def decoder_forward(tokens, patches, params, *, num_heads, vocab_tile=128):
    B, S = tokens.shape
    _, Sp, Pemb = patches.shape
    Wemb = params["wte"].shape[1]
    voc = params["final"]["wp"].shape[1]
    L = len(params["blocks"])
    M, N = B * S, B * Sp

    kp, meta = prepare_kernel_params(params, num_heads=num_heads,
                                     vocab_tile=vocab_tile)
    pemb_pad, voc_pad = meta["pemb_pad"], meta["voc_pad"]
    ndp, hidp, hdp = meta["ndp"], meta["hidp"], meta["head_dim_pad"]

    # Embedding gather + positional add are glue (gather), done in plain JAX.
    x = jnp.take(params["wte"], tokens, axis=0) + params["pos"][:S][None, :, :]
    x_flat = x.reshape(M, Wemb)

    # Patches: zero-pad Pemb to a 128 multiple and pre-cast to bf16 once.
    p_flat = jnp.pad(patches.reshape(N, Pemb),
                     ((0, 0), (0, pemb_pad - Pemb))).astype(jnp.bfloat16)

    # Cross-batch additive mask (built once, plain JAX): lets the kernel do
    # the score matmul over all batch rows in one shot per head.
    row_b = jnp.repeat(jnp.arange(B, dtype=jnp.int32), S)
    col_b = jnp.repeat(jnp.arange(B, dtype=jnp.int32), Sp)
    mask = jnp.where(row_b[:, None] == col_b[None, :], 0.0, NEG_INF).astype(jnp.float32)

    layer_names = ["wq", "bq", "wkv", "bkv", "wc", "bc",
                   "g1", "be1", "g2", "be2", "w1", "b1", "w2", "b2"]
    layer_ws = [kp[n] for n in layer_names]
    final_ln = [kp["gf"], kp["bf"]]

    def layer_spec(a):
        return pl.BlockSpec((1,) + a.shape[1:],
                            lambda l, _nd=a.ndim: (l,) + (0,) * (_nd - 1))

    def const_spec(a):
        return pl.BlockSpec(a.shape, lambda l, _nd=a.ndim: (0,) * _nd)

    in_specs = ([const_spec(x_flat), const_spec(p_flat), const_spec(mask)]
                + [layer_spec(w) for w in layer_ws]
                + [const_spec(w) for w in final_ln])

    # Cost estimate + explicit VMEM budget for the layer stack.
    weight_bytes = sum(_nbytes(w) for w in layer_ws)
    flops_layer = L * (2 * M * Wemb * ndp
                       + 2 * N * pemb_pad * 2 * ndp
                       + num_heads * 4 * M * N * hdp
                       + 2 * M * ndp * Wemb
                       + 2 * M * Wemb * hidp + 2 * M * hidp * Wemb)
    trans_layer = L * (num_heads * M * N + M * hidp)
    bytes_layer = (weight_bytes + _nbytes(x_flat) + _nbytes(p_flat)
                   + _nbytes(mask) + sum(_nbytes(w) for w in final_ln)
                   + M * Wemb * 2)
    per_step_bytes = (weight_bytes // L + _nbytes(x_flat) + _nbytes(p_flat)
                      + _nbytes(mask) + 2 * Wemb * 4
                      + M * Wemb * 2 + M * Wemb * 4)
    vmem_layer = int(min(64 << 20, max(32 << 20, 3 * per_step_bytes)))

    layer_kernel = functools.partial(
        decoder_layer_kernel, num_heads=num_heads,
        head_dim=meta["head_dim"], head_dim_pad=hdp)

    xn_flat = pl.pallas_call(
        layer_kernel,
        out_shape=jax.ShapeDtypeStruct((M, Wemb), jnp.bfloat16),
        grid_spec=pltpu.PrefetchScalarGridSpec(
            num_scalar_prefetch=0,
            grid=(L,),
            in_specs=in_specs,
            out_specs=pl.BlockSpec((M, Wemb), lambda l: (0, 0)),
            scratch_shapes=[pltpu.VMEM((M, Wemb), jnp.float32)]),
        compiler_params=pltpu.CompilerParams(
            dimension_semantics=("arbitrary",),   # layer axis carries x_sc
            vmem_limit_bytes=vmem_layer),
        cost_estimate=pl.CostEstimate(flops=int(flops_layer),
                                      transcendentals=int(trans_layer),
                                      bytes_accessed=int(bytes_layer)),
    )(x_flat, p_flat, mask, *layer_ws, *final_ln)

    # ---------------- Vocab projection: separate call, tiled over V ---------
    wp, bp = kp["wp"], kp["bp"]
    TV = vocab_tile
    n_vtiles = voc_pad // TV
    flops_proj = 2 * M * Wemb * voc_pad
    bytes_proj = _nbytes(wp) + _nbytes(bp) + M * Wemb * 2 + M * voc_pad * 4
    vmem_proj = int(min(64 << 20, max(
        32 << 20, 3 * (M * Wemb * 2 + Wemb * TV * 2 + TV * 4 + M * TV * 4))))

    logits = pl.pallas_call(
        vocab_proj_kernel,
        out_shape=jax.ShapeDtypeStruct((M, voc_pad), jnp.float32),
        grid_spec=pltpu.PrefetchScalarGridSpec(
            num_scalar_prefetch=0,
            grid=(n_vtiles,),
            in_specs=[pl.BlockSpec((M, Wemb), lambda v: (0, 0)),
                      pl.BlockSpec((Wemb, TV), lambda v: (0, v)),
                      pl.BlockSpec((1, TV), lambda v: (0, v))],
            out_specs=pl.BlockSpec((M, TV), lambda v: (0, v))),
        compiler_params=pltpu.CompilerParams(
            dimension_semantics=("parallel",),
            vmem_limit_bytes=vmem_proj),
        cost_estimate=pl.CostEstimate(flops=int(flops_proj), transcendentals=0,
                                      bytes_accessed=int(bytes_proj)),
    )(xn_flat, wp, bp)

    return logits[:, :voc].reshape(B, S, voc)


if __name__ == "__main__":
    # Small shapes consistent with Decoder.forward(tokens, patches).
    B, Sq, Sp = 2, 8, 16
    Wemb, Pemb, new_dim, hidden = 128, 64, 64, 64
    num_heads, n_blocks, voc = 4, 2, 512

    key = jax.random.PRNGKey(0)
    params = init_params(key, Wemb=Wemb, Pemb=Pemb, new_dim=new_dim,
                         hidden=hidden, voc=voc, n_blocks=n_blocks)

    tokens = jax.random.randint(jax.random.fold_in(key, 10), (B, Sq), 0, voc, jnp.int32)
    patches = jax.random.normal(jax.random.fold_in(key, 11), (B, Sp, Pemb), jnp.float32)

    out = decoder_forward(tokens, patches, params, num_heads=num_heads)
    out = jax.block_until_ready(out)
    assert out.shape == (B, Sq, voc), out.shape
    assert bool(jnp.isfinite(out).all())
    print("KERNEL_OK")
</pallas_src>

<mosaic_0001>
module attributes {stable_mosaic.version = 11 : i64} {
  func.func @decoder_layer_kernel(%arg0: i32, %arg1: memref<16x128xf32, #tpu.memory_space<vmem>>, %arg2: memref<32x128xbf16, #tpu.memory_space<vmem>>, %arg3: memref<16x32xf32, #tpu.memory_space<vmem>>, %arg4: memref<1x128x128xbf16, #tpu.memory_space<vmem>>, %arg5: memref<1x1x128xf32, #tpu.memory_space<vmem>>, %arg6: memref<1x128x256xbf16, #tpu.memory_space<vmem>>, %arg7: memref<1x1x256xf32, #tpu.memory_space<vmem>>, %arg8: memref<1x128x128xbf16, #tpu.memory_space<vmem>>, %arg9: memref<1x1x128xf32, #tpu.memory_space<vmem>>, %arg10: memref<1x1x128xf32, #tpu.memory_space<vmem>>, %arg11: memref<1x1x128xf32, #tpu.memory_space<vmem>>, %arg12: memref<1x1x128xf32, #tpu.memory_space<vmem>>, %arg13: memref<1x1x128xf32, #tpu.memory_space<vmem>>, %arg14: memref<1x128x128xbf16, #tpu.memory_space<vmem>>, %arg15: memref<1x1x128xf32, #tpu.memory_space<vmem>>, %arg16: memref<1x128x128xbf16, #tpu.memory_space<vmem>>, %arg17: memref<1x1x128xf32, #tpu.memory_space<vmem>>, %arg18: memref<1x128xf32, #tpu.memory_space<vmem>>, %arg19: memref<1x128xf32, #tpu.memory_space<vmem>>, %arg20: memref<16x128xbf16, #tpu.memory_space<vmem>>, %arg21: memref<16x128xf32, #tpu.memory_space<vmem>>) attributes {dimension_semantics = [#tpu.dimension_semantics<arbitrary>], iteration_bounds = array<i64: 2>, scalar_prefetch = 0 : i64, scratch_operands = 1 : i64, tpu.core_type = #tpu.core_type<tc>, window_params = [{pipeline_mode = #tpu.pipeline_mode<synchronous>, transform_indices = @transform_0, window_bounds = array<i64: 16, 128>}, {pipeline_mode = #tpu.pipeline_mode<synchronous>, transform_indices = @transform_1, window_bounds = array<i64: 32, 128>}, {pipeline_mode = #tpu.pipeline_mode<synchronous>, transform_indices = @transform_2, window_bounds = array<i64: 16, 32>}, {transform_indices = @transform_3, window_bounds = array<i64: 1, 128, 128>}, {transform_indices = @transform_4, window_bounds = array<i64: 1, 1, 128>}, {transform_indices = @transform_5, window_bounds = array<i64: 1, 128, 256>}, {transform_indices = @transform_6, window_bounds = array<i64: 1, 1, 256>}, {transform_indices = @transform_7, window_bounds = array<i64: 1, 128, 128>}, {transform_indices = @transform_8, window_bounds = array<i64: 1, 1, 128>}, {transform_indices = @transform_9, window_bounds = array<i64: 1, 1, 128>}, {transform_indices = @transform_10, window_bounds = array<i64: 1, 1, 128>}, {transform_indices = @transform_11, window_bounds = array<i64: 1, 1, 128>}, {transform_indices = @transform_12, window_bounds = array<i64: 1, 1, 128>}, {transform_indices = @transform_13, window_bounds = array<i64: 1, 128, 128>}, {transform_indices = @transform_14, window_bounds = array<i64: 1, 1, 128>}, {transform_indices = @transform_15, window_bounds = array<i64: 1, 128, 128>}, {transform_indices = @transform_16, window_bounds = array<i64: 1, 1, 128>}, {pipeline_mode = #tpu.pipeline_mode<synchronous>, transform_indices = @transform_17, window_bounds = array<i64: 1, 128>}, {pipeline_mode = #tpu.pipeline_mode<synchronous>, transform_indices = @transform_18, window_bounds = array<i64: 1, 128>}, {pipeline_mode = #tpu.pipeline_mode<synchronous>, transform_indices = @transform_19, window_bounds = array<i64: 16, 128>}]} {
    %c0_i32 = arith.constant 0 : i32
    %0 = arith.cmpi eq, %arg0, %c0_i32 : i32
    %1 = arith.extui %0 : i1 to i32
    %c0_i32_0 = arith.constant 0 : i32
    %2 = arith.cmpi ne, %1, %c0_i32_0 : i32
    scf.if %2 {
      %c0_86 = arith.constant 0 : index
      %c0_87 = arith.constant 0 : index
      %189 = vector.load %arg1[%c0_86, %c0_87] : memref<16x128xf32, #tpu.memory_space<vmem>>, vector<16x128xf32>
      %c0_88 = arith.constant 0 : index
      %c0_89 = arith.constant 0 : index
      %190 = vector.load %arg21[%c0_88, %c0_89] : memref<16x128xf32, #tpu.memory_space<vmem>>, vector<16x128xf32>
      tpu.vector_store %arg21[%c0_88, %c0_89], %189 {strides = array<i32>} : memref<16x128xf32, #tpu.memory_space<vmem>>, vector<16x128xf32>,
    } else {
    }
    %c0 = arith.constant 0 : index
    %c0_1 = arith.constant 0 : index
    %3 = vector.load %arg21[%c0, %c0_1] : memref<16x128xf32, #tpu.memory_space<vmem>>, vector<16x128xf32>
    %4 = arith.truncf %3 : vector<16x128xf32> to vector<16x128xbf16>
    %c0_2 = arith.constant 0 : index
    %c0_3 = arith.constant 0 : index
    %5 = vector.load %arg2[%c0_2, %c0_3] : memref<32x128xbf16, #tpu.memory_space<vmem>>, vector<32x128xbf16>
    %c0_4 = arith.constant 0 : index
    %c0_5 = arith.constant 0 : index
    %6 = vector.load %arg3[%c0_4, %c0_5] : memref<16x32xf32, #tpu.memory_space<vmem>>, vector<16x32xf32>
    %c0_6 = arith.constant 0 : index
    %c0_7 = arith.constant 0 : index
    %c0_8 = arith.constant 0 : index
    %7 = vector.load %arg4[%c0_6, %c0_7, %c0_8] : memref<1x128x128xbf16, #tpu.memory_space<vmem>>, vector<1x128x128xbf16>
    %8 = vector.shape_cast %7 : vector<1x128x128xbf16> to vector<128x128xbf16>
    %cst = arith.constant dense<0.000000e+00> : vector<16x128xf32>
    %9 = tpu.matmul %4, %8, %cst {dimension_numbers = #tpu.dot_dimension_numbers<[1], [0], [0], [1], [0, 0, 1, 1], [], []>} : vector<16x128xbf16>, vector<128x128xbf16>, vector<16x128xf32> -> vector<16x128xf32>
    %c0_9 = arith.constant 0 : index
    %c0_10 = arith.constant 0 : index
    %c0_11 = arith.constant 0 : index
    %10 = vector.load %arg5[%c0_9, %c0_10, %c0_11] : memref<1x1x128xf32, #tpu.memory_space<vmem>>, vector<1x1x128xf32>
    %11 = vector.shape_cast %10 : vector<1x1x128xf32> to vector<1x128xf32>
    %12 = vector.broadcast %11 : vector<1x128xf32> to vector<16x128xf32>
    %13 = arith.addf %9, %12 : vector<16x128xf32>
    %cst_12 = arith.constant 2.500000e-01 : f32
    %14 = vector.broadcast %cst_12 : f32 to vector<16x128xf32>
    %15 = arith.mulf %13, %14 : vector<16x128xf32>
    %c0_13 = arith.constant 0 : index
    %c0_14 = arith.constant 0 : index
    %c0_15 = arith.constant 0 : index
    %16 = vector.load %arg6[%c0_13, %c0_14, %c0_15] : memref<1x128x256xbf16, #tpu.memory_space<vmem>>, vector<1x128x256xbf16>
    %17 = vector.shape_cast %16 : vector<1x128x256xbf16> to vector<128x256xbf16>
    %cst_16 = arith.constant dense<0.000000e+00> : vector<32x256xf32>
    %18 = tpu.matmul %5, %17, %cst_16 {dimension_numbers = #tpu.dot_dimension_numbers<[1], [0], [0], [1], [0, 0, 1, 1], [], []>} : vector<32x128xbf16>, vector<128x256xbf16>, vector<32x256xf32> -> vector<32x256xf32>
    %c0_17 = arith.constant 0 : index
    %c0_18 = arith.constant 0 : index
    %c0_19 = arith.constant 0 : index
    %19 = vector.load %arg7[%c0_17, %c0_18, %c0_19] : memref<1x1x256xf32, #tpu.memory_space<vmem>>, vector<1x1x256xf32>
    %20 = vector.shape_cast %19 : vector<1x1x256xf32> to vector<1x256xf32>
    %21 = vector.broadcast %20 : vector<1x256xf32> to vector<32x256xf32>
    %22 = arith.addf %18, %21 : vector<32x256xf32>
    %23 = arith.truncf %15 : vector<16x128xf32> to vector<16x128xbf16>
    %24 = arith.truncf %22 : vector<32x256xf32> to vector<32x256xbf16>
    %25 = vector.extract_strided_slice %23 {offsets = [0, 0], sizes = [16, 32], strides = [1, 1]} : vector<16x128xbf16> to vector<16x32xbf16>
    %26 = vector.extract_strided_slice %24 {offsets = [0, 0], sizes = [32, 32], strides = [1, 1]} : vector<32x256xbf16> to vector<32x32xbf16>
    %27 = vector.extract_strided_slice %24 {offsets = [0, 128], sizes = [32, 32], strides = [1, 1]} : vector<32x256xbf16> to vector<32x32xbf16>
    %cst_20 = arith.constant dense<0.000000e+00> : vector<16x32xf32>
    %28 = tpu.matmul %25, %26, %cst_20 {dimension_numbers = #tpu.dot_dimension_numbers<[1], [1], [0], [0], [0, 0, 1, 0], [], []>} : vector<16x32xbf16>, vector<32x32xbf16>, vector<16x32xf32> -> vector<16x32xf32>
    %29 = arith.addf %28, %6 : vector<16x32xf32>
    %cst_21 = arith.constant dense<0xFF800000> : vector<16xf32>
    %30 = vector.multi_reduction <maximumf>, %29, %cst_21 [1] : vector<16x32xf32> to vector<16xf32>
    %31 = vector.shape_cast %30 : vector<16xf32> to vector<16x1xf32>
    %32 = vector.broadcast %31 : vector<16x1xf32> to vector<16x32xf32>
    %33 = arith.subf %29, %32 : vector<16x32xf32>
    %34 = math.exp %33 : vector<16x32xf32>
    %cst_22 = arith.constant dense<0.000000e+00> : vector<16xf32>
    %35 = vector.multi_reduction <add>, %34, %cst_22 [1] : vector<16x32xf32> to vector<16xf32>
    %36 = vector.shape_cast %35 : vector<16xf32> to vector<16x1xf32>
    %37 = tpu.reciprocal %36 {approx = true} : vector<16x1xf32> -> vector<16x1xf32>
    %38 = vector.broadcast %37 : vector<16x1xf32> to vector<16x32xf32>
    %39 = arith.mulf %34, %38 : vector<16x32xf32>
    %40 = arith.truncf %39 : vector<16x32xf32> to vector<16x32xbf16>
    %cst_23 = arith.constant dense<0.000000e+00> : vector<16x32xf32>
    %41 = tpu.matmul %40, %27, %cst_23 {dimension_numbers = #tpu.dot_dimension_numbers<[1], [0], [0], [1], [0, 0, 1, 1], [], []>} : vector<16x32xbf16>, vector<32x32xbf16>, vector<16x32xf32> -> vector<16x32xf32>
    %42 = vector.extract_strided_slice %23 {offsets = [0, 32], sizes = [16, 32], strides = [1, 1]} : vector<16x128xbf16> to vector<16x32xbf16>
    %43 = vector.extract_strided_slice %24 {offsets = [0, 32], sizes = [32, 32], strides = [1, 1]} : vector<32x256xbf16> to vector<32x32xbf16>
    %44 = vector.extract_strided_slice %24 {offsets = [0, 160], sizes = [32, 32], strides = [1, 1]} : vector<32x256xbf16> to vector<32x32xbf16>
    %cst_24 = arith.constant dense<0.000000e+00> : vector<16x32xf32>
    %45 = tpu.matmul %42, %43, %cst_24 {dimension_numbers = #tpu.dot_dimension_numbers<[1], [1], [0], [0], [0, 0, 1, 0], [], []>} : vector<16x32xbf16>, vector<32x32xbf16>, vector<16x32xf32> -> vector<16x32xf32>
    %46 = arith.addf %45, %6 : vector<16x32xf32>
    %cst_25 = arith.constant dense<0xFF800000> : vector<16xf32>
    %47 = vector.multi_reduction <maximumf>, %46, %cst_25 [1] : vector<16x32xf32> to vector<16xf32>
    %48 = vector.shape_cast %47 : vector<16xf32> to vector<16x1xf32>
    %49 = vector.broadcast %48 : vector<16x1xf32> to vector<16x32xf32>
    %50 = arith.subf %46, %49 : vector<16x32xf32>
    %51 = math.exp %50 : vector<16x32xf32>
    %cst_26 = arith.constant dense<0.000000e+00> : vector<16xf32>
    %52 = vector.multi_reduction <add>, %51, %cst_26 [1] : vector<16x32xf32> to vector<16xf32>
    %53 = vector.shape_cast %52 : vector<16xf32> to vector<16x1xf32>
    %54 = tpu.reciprocal %53 {approx = true} : vector<16x1xf32> -> vector<16x1xf32>
    %55 = vector.broadcast %54 : vector<16x1xf32> to vector<16x32xf32>
    %56 = arith.mulf %51, %55 : vector<16x32xf32>
    %57 = arith.truncf %56 : vector<16x32xf32> to vector<16x32xbf16>
    %cst_27 = arith.constant dense<0.000000e+00> : vector<16x32xf32>
    %58 = tpu.matmul %57, %44, %cst_27 {dimension_numbers = #tpu.dot_dimension_numbers<[1], [0], [0], [1], [0, 0, 1, 1], [], []>} : vector<16x32xbf16>, vector<32x32xbf16>, vector<16x32xf32> -> vector<16x32xf32>
    %59 = vector.extract_strided_slice %23 {offsets = [0, 64], sizes = [16, 32], strides = [1, 1]} : vector<16x128xbf16> to vector<16x32xbf16>
    %60 = vector.extract_strided_slice %24 {offsets = [0, 64], sizes = [32, 32], strides = [1, 1]} : vector<32x256xbf16> to vector<32x32xbf16>
    %61 = vector.extract_strided_slice %24 {offsets = [0, 192], sizes = [32, 32], strides = [1, 1]} : vector<32x256xbf16> to vector<32x32xbf16>
    %cst_28 = arith.constant dense<0.000000e+00> : vector<16x32xf32>
    %62 = tpu.matmul %59, %60, %cst_28 {dimension_numbers = #tpu.dot_dimension_numbers<[1], [1], [0], [0], [0, 0, 1, 0], [], []>} : vector<16x32xbf16>, vector<32x32xbf16>, vector<16x32xf32> -> vector<16x32xf32>
    %63 = arith.addf %62, %6 : vector<16x32xf32>
    %cst_29 = arith.constant dense<0xFF800000> : vector<16xf32>
    %64 = vector.multi_reduction <maximumf>, %63, %cst_29 [1] : vector<16x32xf32> to vector<16xf32>
    %65 = vector.shape_cast %64 : vector<16xf32> to vector<16x1xf32>
    %66 = vector.broadcast %65 : vector<16x1xf32> to vector<16x32xf32>
    %67 = arith.subf %63, %66 : vector<16x32xf32>
    %68 = math.exp %67 : vector<16x32xf32>
    %cst_30 = arith.constant dense<0.000000e+00> : vector<16xf32>
    %69 = vector.multi_reduction <add>, %68, %cst_30 [1] : vector<16x32xf32> to vector<16xf32>
    %70 = vector.shape_cast %69 : vector<16xf32> to vector<16x1xf32>
    %71 = tpu.reciprocal %70 {approx = true} : vector<16x1xf32> -> vector<16x1xf32>
    %72 = vector.broadcast %71 : vector<16x1xf32> to vector<16x32xf32>
    %73 = arith.mulf %68, %72 : vector<16x32xf32>
    %74 = arith.truncf %73 : vector<16x32xf32> to vector<16x32xbf16>
    %cst_31 = arith.constant dense<0.000000e+00> : vector<16x32xf32>
    %75 = tpu.matmul %74, %61, %cst_31 {dimension_numbers = #tpu.dot_dimension_numbers<[1], [0], [0], [1], [0, 0, 1, 1], [], []>} : vector<16x32xbf16>, vector<32x32xbf16>, vector<16x32xf32> -> vector<16x32xf32>
    %76 = vector.extract_strided_slice %23 {offsets = [0, 96], sizes = [16, 32], strides = [1, 1]} : vector<16x128xbf16> to vector<16x32xbf16>
    %77 = vector.extract_strided_slice %24 {offsets = [0, 96], sizes = [32, 32], strides = [1, 1]} : vector<32x256xbf16> to vector<32x32xbf16>
    %78 = vector.extract_strided_slice %24 {offsets = [0, 224], sizes = [32, 32], strides = [1, 1]} : vector<32x256xbf16> to vector<32x32xbf16>
    %cst_32 = arith.constant dense<0.000000e+00> : vector<16x32xf32>
    %79 = tpu.matmul %76, %77, %cst_32 {dimension_numbers = #tpu.dot_dimension_numbers<[1], [1], [0], [0], [0, 0, 1, 0], [], []>} : vector<16x32xbf16>, vector<32x32xbf16>, vector<16x32xf32> -> vector<16x32xf32>
    %80 = arith.addf %79, %6 : vector<16x32xf32>
    %cst_33 = arith.constant dense<0xFF800000> : vector<16xf32>
    %81 = vector.multi_reduction <maximumf>, %80, %cst_33 [1] : vector<16x32xf32> to vector<16xf32>
    %82 = vector.shape_cast %81 : vector<16xf32> to vector<16x1xf32>
    %83 = vector.broadcast %82 : vector<16x1xf32> to vector<16x32xf32>
    %84 = arith.subf %80, %83 : vector<16x32xf32>
    %85 = math.exp %84 : vector<16x32xf32>
    %cst_34 = arith.constant dense<0.000000e+00> : vector<16xf32>
    %86 = vector.multi_reduction <add>, %85, %cst_34 [1] : vector<16x32xf32> to vector<16xf32>
    %87 = vector.shape_cast %86 : vector<16xf32> to vector<16x1xf32>
    %88 = tpu.reciprocal %87 {approx = true} : vector<16x1xf32> -> vector<16x1xf32>
    %89 = vector.broadcast %88 : vector<16x1xf32> to vector<16x32xf32>
    %90 = arith.mulf %85, %89 : vector<16x32xf32>
    %91 = arith.truncf %90 : vector<16x32xf32> to vector<16x32xbf16>
    %cst_35 = arith.constant dense<0.000000e+00> : vector<16x32xf32>
    %92 = tpu.matmul %91, %78, %cst_35 {dimension_numbers = #tpu.dot_dimension_numbers<[1], [0], [0], [1], [0, 0, 1, 1], [], []>} : vector<16x32xbf16>, vector<32x32xbf16>, vector<16x32xf32> -> vector<16x32xf32>
    %93 = tpu.concatenate %41, %58, %75, %92 in 1 : vector<16x32xf32>, vector<16x32xf32>, vector<16x32xf32>, vector<16x32xf32> -> vector<16x128xf32>
    %94 = arith.truncf %93 : vector<16x128xf32> to vector<16x128xbf16>
    %c0_36 = arith.constant 0 : index
    %c0_37 = arith.constant 0 : index
    %c0_38 = arith.constant 0 : index
    %95 = vector.load %arg8[%c0_36, %c0_37, %c0_38] : memref<1x128x128xbf16, #tpu.memory_space<vmem>>, vector<1x128x128xbf16>
    %96 = vector.shape_cast %95 : vector<1x128x128xbf16> to vector<128x128xbf16>
    %cst_39 = arith.constant dense<0.000000e+00> : vector<16x128xf32>
    %97 = tpu.matmul %94, %96, %cst_39 {dimension_numbers = #tpu.dot_dimension_numbers<[1], [0], [0], [1], [0, 0, 1, 1], [], []>} : vector<16x128xbf16>, vector<128x128xbf16>, vector<16x128xf32> -> vector<16x128xf32>
    %c0_40 = arith.constant 0 : index
    %c0_41 = arith.constant 0 : index
    %c0_42 = arith.constant 0 : index
    %98 = vector.load %arg9[%c0_40, %c0_41, %c0_42] : memref<1x1x128xf32, #tpu.memory_space<vmem>>, vector<1x1x128xf32>
    %99 = vector.shape_cast %98 : vector<1x1x128xf32> to vector<1x128xf32>
    %100 = vector.broadcast %99 : vector<1x128xf32> to vector<16x128xf32>
    %101 = arith.addf %97, %100 : vector<16x128xf32>
    %102 = arith.addf %101, %3 : vector<16x128xf32>
    %c0_43 = arith.constant 0 : index
    %c0_44 = arith.constant 0 : index
    %c0_45 = arith.constant 0 : index
    %103 = vector.load %arg10[%c0_43, %c0_44, %c0_45] : memref<1x1x128xf32, #tpu.memory_space<vmem>>, vector<1x1x128xf32>
    %104 = vector.shape_cast %103 : vector<1x1x128xf32> to vector<1x128xf32>
    %c0_46 = arith.constant 0 : index
    %c0_47 = arith.constant 0 : index
    %c0_48 = arith.constant 0 : index
    %105 = vector.load %arg11[%c0_46, %c0_47, %c0_48] : memref<1x1x128xf32, #tpu.memory_space<vmem>>, vector<1x1x128xf32>
    %106 = vector.shape_cast %105 : vector<1x1x128xf32> to vector<1x128xf32>
    %cst_49 = arith.constant dense<0.000000e+00> : vector<16xf32>
    %107 = vector.multi_reduction <add>, %102, %cst_49 [1] : vector<16x128xf32> to vector<16xf32>
    %108 = vector.shape_cast %107 : vector<16xf32> to vector<16x1xf32>
    %cst_50 = arith.constant 1.280000e+02 : f32
    %109 = vector.broadcast %cst_50 : f32 to vector<16x1xf32>
    %110 = arith.divf %108, %109 : vector<16x1xf32>
    %111 = vector.broadcast %110 : vector<16x1xf32> to vector<16x128xf32>
    %112 = arith.subf %102, %111 : vector<16x128xf32>
    %113 = arith.mulf %112, %112 : vector<16x128xf32>
    %cst_51 = arith.constant dense<0.000000e+00> : vector<16xf32>
    %114 = vector.multi_reduction <add>, %113, %cst_51 [1] : vector<16x128xf32> to vector<16xf32>
    %115 = vector.shape_cast %114 : vector<16xf32> to vector<16x1xf32>
    %cst_52 = arith.constant 1.280000e+02 : f32
    %116 = vector.broadcast %cst_52 : f32 to vector<16x1xf32>
    %117 = arith.divf %115, %116 : vector<16x1xf32>
    %118 = vector.broadcast %110 : vector<16x1xf32> to vector<16x128xf32>
    %119 = arith.subf %102, %118 : vector<16x128xf32>
    %cst_53 = arith.constant 9.99999974E-6 : f32
    %120 = vector.broadcast %cst_53 : f32 to vector<16x1xf32>
    %121 = arith.addf %117, %120 : vector<16x1xf32>
    %122 = math.rsqrt %121 : vector<16x1xf32>
    %123 = vector.broadcast %122 : vector<16x1xf32> to vector<16x128xf32>
    %124 = arith.mulf %119, %123 : vector<16x128xf32>
    %125 = vector.broadcast %104 : vector<1x128xf32> to vector<16x128xf32>
    %126 = arith.mulf %124, %125 : vector<16x128xf32>
    %127 = vector.broadcast %106 : vector<1x128xf32> to vector<16x128xf32>
    %128 = arith.addf %126, %127 : vector<16x128xf32>
    %c0_54 = arith.constant 0 : index
    %c0_55 = arith.constant 0 : index
    %c0_56 = arith.constant 0 : index
    %129 = vector.load %arg12[%c0_54, %c0_55, %c0_56] : memref<1x1x128xf32, #tpu.memory_space<vmem>>, vector<1x1x128xf32>
    %130 = vector.shape_cast %129 : vector<1x1x128xf32> to vector<1x128xf32>
    %c0_57 = arith.constant 0 : index
    %c0_58 = arith.constant 0 : index
    %c0_59 = arith.constant 0 : index
    %131 = vector.load %arg13[%c0_57, %c0_58, %c0_59] : memref<1x1x128xf32, #tpu.memory_space<vmem>>, vector<1x1x128xf32>
    %132 = vector.shape_cast %131 : vector<1x1x128xf32> to vector<1x128xf32>
    %cst_60 = arith.constant dense<0.000000e+00> : vector<16xf32>
    %133 = vector.multi_reduction <add>, %128, %cst_60 [1] : vector<16x128xf32> to vector<16xf32>
    %134 = vector.shape_cast %133 : vector<16xf32> to vector<16x1xf32>
    %cst_61 = arith.constant 1.280000e+02 : f32
    %135 = vector.broadcast %cst_61 : f32 to vector<16x1xf32>
    %136 = arith.divf %134, %135 : vector<16x1xf32>
    %137 = vector.broadcast %136 : vector<16x1xf32> to vector<16x128xf32>
    %138 = arith.subf %128, %137 : vector<16x128xf32>
    %139 = arith.mulf %138, %138 : vector<16x128xf32>
    %cst_62 = arith.constant dense<0.000000e+00> : vector<16xf32>
    %140 = vector.multi_reduction <add>, %139, %cst_62 [1] : vector<16x128xf32> to vector<16xf32>
    %141 = vector.shape_cast %140 : vector<16xf32> to vector<16x1xf32>
    %cst_63 = arith.constant 1.280000e+02 : f32
    %142 = vector.broadcast %cst_63 : f32 to vector<16x1xf32>
    %143 = arith.divf %141, %142 : vector<16x1xf32>
    %144 = vector.broadcast %136 : vector<16x1xf32> to vector<16x128xf32>
    %145 = arith.subf %128, %144 : vector<16x128xf32>
    %cst_64 = arith.constant 9.99999974E-6 : f32
    %146 = vector.broadcast %cst_64 : f32 to vector<16x1xf32>
    %147 = arith.addf %143, %146 : vector<16x1xf32>
    %148 = math.rsqrt %147 : vector<16x1xf32>
    %149 = vector.broadcast %148 : vector<16x1xf32> to vector<16x128xf32>
    %150 = arith.mulf %145, %149 : vector<16x128xf32>
    %151 = vector.broadcast %130 : vector<1x128xf32> to vector<16x128xf32>
    %152 = arith.mulf %150, %151 : vector<16x128xf32>
    %153 = vector.broadcast %132 : vector<1x128xf32> to vector<16x128xf32>
    %154 = arith.addf %152, %153 : vector<16x128xf32>
    %155 = arith.truncf %154 : vector<16x128xf32> to vector<16x128xbf16>
    %c0_65 = arith.constant 0 : index
    %c0_66 = arith.constant 0 : index
    %c0_67 = arith.constant 0 : index
    %156 = vector.load %arg14[%c0_65, %c0_66, %c0_67] : memref<1x128x128xbf16, #tpu.memory_space<vmem>>, vector<1x128x128xbf16>
    %157 = vector.shape_cast %156 : vector<1x128x128xbf16> to vector<128x128xbf16>
    %cst_68 = arith.constant dense<0.000000e+00> : vector<16x128xf32>
    %158 = tpu.matmul %155, %157, %cst_68 {dimension_numbers = #tpu.dot_dimension_numbers<[1], [0], [0], [1], [0, 0, 1, 1], [], []>} : vector<16x128xbf16>, vector<128x128xbf16>, vector<16x128xf32> -> vector<16x128xf32>
    %c0_69 = arith.constant 0 : index
    %c0_70 = arith.constant 0 : index
    %c0_71 = arith.constant 0 : index
    %159 = vector.load %arg15[%c0_69, %c0_70, %c0_71] : memref<1x1x128xf32, #tpu.memory_space<vmem>>, vector<1x1x128xf32>
    %160 = vector.shape_cast %159 : vector<1x1x128xf32> to vector<1x128xf32>
    %161 = vector.broadcast %160 : vector<1x128xf32> to vector<16x128xf32>
    %162 = arith.addf %158, %161 : vector<16x128xf32>
    %163 = arith.mulf %162, %162 : vector<16x128xf32>
    %164 = arith.mulf %162, %163 : vector<16x128xf32>
    %cst_72 = arith.constant 4.471500e-02 : f32
    %165 = vector.broadcast %cst_72 : f32 to vector<16x128xf32>
    %166 = arith.mulf %165, %164 : vector<16x128xf32>
    %167 = arith.addf %162, %166 : vector<16x128xf32>
    %cst_73 = arith.constant 0.797884583 : f32
    %168 = vector.broadcast %cst_73 : f32 to vector<16x128xf32>
    %169 = arith.mulf %168, %167 : vector<16x128xf32>
    %170 = math.tanh %169 : vector<16x128xf32>
    %cst_74 = arith.constant 1.000000e+00 : f32
    %171 = vector.broadcast %cst_74 : f32 to vector<16x128xf32>
    %172 = arith.addf %171, %170 : vector<16x128xf32>
    %cst_75 = arith.constant 5.000000e-01 : f32
    %173 = vector.broadcast %cst_75 : f32 to vector<16x128xf32>
    %174 = arith.mulf %173, %172 : vector<16x128xf32>
    %175 = arith.mulf %162, %174 : vector<16x128xf32>
    %176 = arith.truncf %175 : vector<16x128xf32> to vector<16x128xbf16>
    %c0_76 = arith.constant 0 : index
    %c0_77 = arith.constant 0 : index
    %c0_78 = arith.constant 0 : index
    %177 = vector.load %arg16[%c0_76, %c0_77, %c0_78] : memref<1x128x128xbf16, #tpu.memory_space<vmem>>, vector<1x128x128xbf16>
    %178 = vector.shape_cast %177 : vector<1x128x128xbf16> to vector<128x128xbf16>
    %cst_79 = arith.constant dense<0.000000e+00> : vector<16x128xf32>
    %179 = tpu.matmul %176, %178, %cst_79 {dimension_numbers = #tpu.dot_dimension_numbers<[1], [0], [0], [1], [0, 0, 1, 1], [], []>} : vector<16x128xbf16>, vector<128x128xbf16>, vector<16x128xf32> -> vector<16x128xf32>
    %c0_80 = arith.constant 0 : index
    %c0_81 = arith.constant 0 : index
    %c0_82 = arith.constant 0 : index
    %180 = vector.load %arg17[%c0_80, %c0_81, %c0_82] : memref<1x1x128xf32, #tpu.memory_space<vmem>>, vector<1x1x128xf32>
    %181 = vector.shape_cast %180 : vector<1x1x128xf32> to vector<1x128xf32>
    %182 = vector.broadcast %181 : vector<1x128xf32> to vector<16x128xf32>
    %183 = arith.addf %179, %182 : vector<16x128xf32>
    %184 = arith.addf %128, %183 : vector<16x128xf32>
    %c0_83 = arith.constant 0 : index
    %c0_84 = arith.constant 0 : index
    %185 = vector.load %arg21[%c0_83, %c0_84] : memref<16x128xf32, #tpu.memory_space<vmem>>, vector<16x128xf32>
    tpu.vector_store %arg21[%c0_83, %c0_84], %184 {strides = array<i32>} : memref<16x128xf32, #tpu.memory_space<vmem>>, vector<16x128xf32>,
    %c1_i32 = arith.constant 1 : i32
    %186 = arith.cmpi eq, %arg0, %c1_i32 : i32
    %187 = arith.extui %186 : i1 to i32
    %c0_i32_85 = arith.constant 0 : i32
    %188 = arith.cmpi ne, %187, %c0_i32_85 : i32
    scf.if %188 {
      %c0_86 = arith.constant 0 : index
      %c0_87 = arith.constant 0 : index
      %189 = vector.load %arg18[%c0_86, %c0_87] : memref<1x128xf32, #tpu.memory_space<vmem>>, vector<1x128xf32>
      %c0_88 = arith.constant 0 : index
      %c0_89 = arith.constant 0 : index
      %190 = vector.load %arg19[%c0_88, %c0_89] : memref<1x128xf32, #tpu.memory_space<vmem>>, vector<1x128xf32>
      %cst_90 = arith.constant dense<0.000000e+00> : vector<16xf32>
      %191 = vector.multi_reduction <add>, %184, %cst_90 [1] : vector<16x128xf32> to vector<16xf32>
      %192 = vector.shape_cast %191 : vector<16xf32> to vector<16x1xf32>
      %cst_91 = arith.constant 1.280000e+02 : f32
      %193 = vector.broadcast %cst_91 : f32 to vector<16x1xf32>
      %194 = arith.divf %192, %193 : vector<16x1xf32>
      %195 = vector.broadcast %194 : vector<16x1xf32> to vector<16x128xf32>
      %196 = arith.subf %184, %195 : vector<16x128xf32>
      %197 = arith.mulf %196, %196 : vector<16x128xf32>
      %cst_92 = arith.constant dense<0.000000e+00> : vector<16xf32>
      %198 = vector.multi_reduction <add>, %197, %cst_92 [1] : vector<16x128xf32> to vector<16xf32>
      %199 = vector.shape_cast %198 : vector<16xf32> to vector<16x1xf32>
      %cst_93 = arith.constant 1.280000e+02 : f32
      %200 = vector.broadcast %cst_93 : f32 to vector<16x1xf32>
      %201 = arith.divf %199, %200 : vector<16x1xf32>
      %202 = vector.broadcast %194 : vector<16x1xf32> to vector<16x128xf32>
      %203 = arith.subf %184, %202 : vector<16x128xf32>
      %cst_94 = arith.constant 9.99999974E-6 : f32
      %204 = vector.broadcast %cst_94 : f32 to vector<16x1xf32>
      %205 = arith.addf %201, %204 : vector<16x1xf32>
      %206 = math.rsqrt %205 : vector<16x1xf32>
      %207 = vector.broadcast %206 : vector<16x1xf32> to vector<16x128xf32>
      %208 = arith.mulf %203, %207 : vector<16x128xf32>
      %209 = vector.broadcast %189 : vector<1x128xf32> to vector<16x128xf32>
      %210 = arith.mulf %208, %209 : vector<16x128xf32>
      %211 = vector.broadcast %190 : vector<1x128xf32> to vector<16x128xf32>
      %212 = arith.addf %210, %211 : vector<16x128xf32>
      %213 = arith.truncf %212 : vector<16x128xf32> to vector<16x128xbf16>
      %c0_95 = arith.constant 0 : index
      %c0_96 = arith.constant 0 : index
      %214 = vector.load %arg20[%c0_95, %c0_96] : memref<16x128xbf16, #tpu.memory_space<vmem>>, vector<16x128xbf16>
      tpu.vector_store %arg20[%c0_95, %c0_96], %213 {strides = array<i32>} : memref<16x128xbf16, #tpu.memory_space<vmem>>, vector<16x128xbf16>,
    } else {
    }
    return
  }
  func.func @transform_0(%arg0: i32) -> (i32, i32) {
    %c0_i32 = arith.constant 0 : i32
    %c0_i32_0 = arith.constant 0 : i32
    %c0_i32_1 = arith.constant 0 : i32
    return %c0_i32, %c0_i32_0 : i32, i32
  }
  func.func @transform_1(%arg0: i32) -> (i32, i32) {
    %c0_i32 = arith.constant 0 : i32
    %c0_i32_0 = arith.constant 0 : i32
    %c0_i32_1 = arith.constant 0 : i32
    return %c0_i32, %c0_i32_0 : i32, i32
  }
  func.func @transform_2(%arg0: i32) -> (i32, i32) {
    %c0_i32 = arith.constant 0 : i32
    %c0_i32_0 = arith.constant 0 : i32
    %c0_i32_1 = arith.constant 0 : i32
    return %c0_i32, %c0_i32_0 : i32, i32
  }
  func.func @transform_3(%arg0: i32) -> (i32, i32, i32) {
    %c0_i32 = arith.constant 0 : i32
    %c0_i32_0 = arith.constant 0 : i32
    %c0_i32_1 = arith.constant 0 : i32
    return %arg0, %c0_i32, %c0_i32_0 : i32, i32, i32
  }
  func.func @transform_4(%arg0: i32) -> (i32, i32, i32) {
    %c0_i32 = arith.constant 0 : i32
    %c0_i32_0 = arith.constant 0 : i32
    %c0_i32_1 = arith.constant 0 : i32
    return %arg0, %c0_i32, %c0_i32_0 : i32, i32, i32
  }
  func.func @transform_5(%arg0: i32) -> (i32, i32, i32) {
    %c0_i32 = arith.constant 0 : i32
    %c0_i32_0 = arith.constant 0 : i32
    %c0_i32_1 = arith.constant 0 : i32
    return %arg0, %c0_i32, %c0_i32_0 : i32, i32, i32
  }
  func.func @transform_6(%arg0: i32) -> (i32, i32, i32) {
    %c0_i32 = arith.constant 0 : i32
    %c0_i32_0 = arith.constant 0 : i32
    %c0_i32_1 = arith.constant 0 : i32
    return %arg0, %c0_i32, %c0_i32_0 : i32, i32, i32
  }
  func.func @transform_7(%arg0: i32) -> (i32, i32, i32) {
    %c0_i32 = arith.constant 0 : i32
    %c0_i32_0 = arith.constant 0 : i32
    %c0_i32_1 = arith.constant 0 : i32
    return %arg0, %c0_i32, %c0_i32_0 : i32, i32, i32
  }
  func.func @transform_8(%arg0: i32) -> (i32, i32, i32) {
    %c0_i32 = arith.constant 0 : i32
    %c0_i32_0 = arith.constant 0 : i32
    %c0_i32_1 = arith.constant 0 : i32
    return %arg0, %c0_i32, %c0_i32_0 : i32, i32, i32
  }
  func.func @transform_9(%arg0: i32) -> (i32, i32, i32) {
    %c0_i32 = arith.constant 0 : i32
    %c0_i32_0 = arith.constant 0 : i32
    %c0_i32_1 = arith.constant 0 : i32
    return %arg0, %c0_i32, %c0_i32_0 : i32, i32, i32
  }
  func.func @transform_10(%arg0: i32) -> (i32, i32, i32) {
    %c0_i32 = arith.constant 0 : i32
    %c0_i32_0 = arith.constant 0 : i32
    %c0_i32_1 = arith.constant 0 : i32
    return %arg0, %c0_i32, %c0_i32_0 : i32, i32, i32
  }
  func.func @transform_11(%arg0: i32) -> (i32, i32, i32) {
    %c0_i32 = arith.constant 0 : i32
    %c0_i32_0 = arith.constant 0 : i32
    %c0_i32_1 = arith.constant 0 : i32
    return %arg0, %c0_i32, %c0_i32_0 : i32, i32, i32
  }
  func.func @transform_12(%arg0: i32) -> (i32, i32, i32) {
    %c0_i32 = arith.constant 0 : i32
    %c0_i32_0 = arith.constant 0 : i32
    %c0_i32_1 = arith.constant 0 : i32
    return %arg0, %c0_i32, %c0_i32_0 : i32, i32, i32
  }
  func.func @transform_13(%arg0: i32) -> (i32, i32, i32) {
    %c0_i32 = arith.constant 0 : i32
    %c0_i32_0 = arith.constant 0 : i32
    %c0_i32_1 = arith.constant 0 : i32
    return %arg0, %c0_i32, %c0_i32_0 : i32, i32, i32
  }
  func.func @transform_14(%arg0: i32) -> (i32, i32, i32) {
    %c0_i32 = arith.constant 0 : i32
    %c0_i32_0 = arith.constant 0 : i32
    %c0_i32_1 = arith.constant 0 : i32
    return %arg0, %c0_i32, %c0_i32_0 : i32, i32, i32
  }
  func.func @transform_15(%arg0: i32) -> (i32, i32, i32) {
    %c0_i32 = arith.constant 0 : i32
    %c0_i32_0 = arith.constant 0 : i32
    %c0_i32_1 = arith.constant 0 : i32
    return %arg0, %c0_i32, %c0_i32_0 : i32, i32, i32
  }
  func.func @transform_16(%arg0: i32) -> (i32, i32, i32) {
    %c0_i32 = arith.constant 0 : i32
    %c0_i32_0 = arith.constant 0 : i32
    %c0_i32_1 = arith.constant 0 : i32
    return %arg0, %c0_i32, %c0_i32_0 : i32, i32, i32
  }
  func.func @transform_17(%arg0: i32) -> (i32, i32) {
    %c0_i32 = arith.constant 0 : i32
    %c0_i32_0 = arith.constant 0 : i32
    %c0_i32_1 = arith.constant 0 : i32
    return %c0_i32, %c0_i32_0 : i32, i32
  }
  func.func @transform_18(%arg0: i32) -> (i32, i32) {
    %c0_i32 = arith.constant 0 : i32
    %c0_i32_0 = arith.constant 0 : i32
    %c0_i32_1 = arith.constant 0 : i32
    return %c0_i32, %c0_i32_0 : i32, i32
  }
  func.func @transform_19(%arg0: i32) -> (i32, i32) {
    %c0_i32 = arith.constant 0 : i32
    %c0_i32_0 = arith.constant 0 : i32
    %c0_i32_1 = arith.constant 0 : i32
    return %c0_i32, %c0_i32_0 : i32, i32
  }
}

</mosaic_0001>

<bundles_post_ra>
// kernel: tpu_custom_call.1
= control target key start
LH: loop header
LB: loop body
LE: loop exit
PB: predicated region body
PF: predicated region fallthrough
CT: control target
= control target key end

     0   :  { %s4279_s0 = inlined_call_operand.hbm [shape: f32[16,128], index: 0, kind: input, shape index: {}]   ;;  %s4280_s1 = inlined_call_operand.hbm [shape: bf16[32,128], index: 1, kind: input, shape index: {}]   ;;  %s4281_s2 = inlined_call_operand.hbm [shape: f32[16,32], index: 2, kind: input, shape index: {}]   ;;  %s4282_s3 = inlined_call_operand.hbm [shape: bf16[2,128,128], index: 3, kind: input, shape index: {}]   ;;  %s4283_s4 = inlined_call_operand.vmem [shape: f32[2,1,128], index: 4, kind: input, shape index: {}]   ;;  %s4284_s5 = inlined_call_operand.hbm [shape: bf16[2,128,256], index: 5, kind: input, shape index: {}]   ;;  %s4285_s6 = inlined_call_operand.vmem [shape: f32[2,1,256], index: 6, kind: input, shape index: {}]   ;;  %s4286_s7 = inlined_call_operand.hbm [shape: bf16[2,128,128], index: 7, kind: input, shape index: {}]   ;;  %s4287_s8 = inlined_call_operand.vmem [shape: f32[2,1,128], index: 8, kind: input, shape index: {}]   ;;  %s4288_s9 = inlined_call_operand.vmem [shape: f32[2,1,128], index: 9, kind: input, shape index: {}]   ;;  %s4289_s10 = inlined_call_operand.vmem [shape: f32[2,1,128], index: 10, kind: input, shape index: {}]   ;;  %s4290_s11 = inlined_call_operand.vmem [shape: f32[2,1,128], index: 11, kind: input, shape index: {}]   ;;  %s4291_s12 = inlined_call_operand.vmem [shape: f32[2,1,128], index: 12, kind: input, shape index: {}]   ;;  %s4292_s13 = inlined_call_operand.hbm [shape: bf16[2,128,128], index: 13, kind: input, shape index: {}]   ;;  %s4293_s14 = inlined_call_operand.vmem [shape: f32[2,1,128], index: 14, kind: input, shape index: {}]   ;;  %s4294_s15 = inlined_call_operand.hbm [shape: bf16[2,128,128], index: 15, kind: input, shape index: {}]   ;;  %s4295_s16 = inlined_call_operand.vmem [shape: f32[2,1,128], index: 16, kind: input, shape index: {}]   ;;  %s4296_s17 = inlined_call_operand.vmem [shape: f32[1,128], index: 17, kind: input, shape index: {}]   ;;  %s4297_s18 = inlined_call_operand.vmem [shape: f32[1,128], index: 18, kind: input, shape index: {}]   ;;  %s4298_s19 = inlined_call_operand.hbm [shape: bf16[16,128], index: 19, kind: output, shape index: {}]  }
   0x1   :  { %4335 = sst [smem:[#allocation32_spill]] %s4279_s0 }
   0x2   :  { %4336 = sst [smem:[#allocation33_spill]] %s4280_s1 }
   0x3   :  { %4337 = sst [smem:[#allocation34_spill]] %s4281_s2 }
   0x4   :  { %4338 = sst [smem:[#allocation35_spill]] %s4282_s3 }
   0x5   :  { %4339 = sst [smem:[#allocation36_spill]] %s4283_s4 }
   0x6   :  { %4340 = sst [smem:[#allocation37_spill]] %s4284_s5 }
   0x7   :  { %4341 = sst [smem:[#allocation38_spill]] %s4285_s6 }
   0x8   :  { %4342 = sst [smem:[#allocation39_spill]] %s4286_s7 }
   0x9   :  { %4343 = sst [smem:[#allocation40_spill]] %s4287_s8 }
   0xa   :  { %4344 = sst [smem:[#allocation41_spill]] %s4288_s9 }
   0xb   :  { %4345 = sst [smem:[#allocation42_spill]] %s4289_s10 }
   0xc   :  { %4346 = sst [smem:[#allocation43_spill]] %s4290_s11 }
   0xd   :  { %4347 = sst [smem:[#allocation44_spill]] %s4291_s12 }
   0xe   :  { %4348 = sst [smem:[#allocation45_spill]] %s4292_s13 }
   0xf   :  { %4349 = sst [smem:[#allocation46_spill]] %s4293_s14 }
  0x10   :  { %4350 = sst [smem:[#allocation47_spill]] %s4294_s15 }
  0x11   :  { %4351 = sst [smem:[#allocation48_spill]] %s4295_s16 }
  0x12   :  { %4352 = sst [smem:[#allocation49_spill]] %s4296_s17 }
  0x13   :  { %4353 = sst [smem:[#allocation50_spill]] %s4297_s18 }
  0x14   :  { %4354 = sst [smem:[#allocation51_spill]] %s4298_s19 }
  0x15   :  { %24 = vsyncpa [#allocation4], 0 }
  0x16   :  { %25 = vsyncpa [#allocation7], 0 }
  0x17   :  { %26 = vsyncpa [#allocation10], 0 }
  0x18   :  { %28 = vsyncpa [#allocation10 + $0x1], 0 }
  0x19   :  { %29 = vsyncpa [#allocation13], 0 }
  0x1a   :  { %31 = vsyncpa [#allocation13 + $0x1], 0 }
  0x1b   :  { %32 = vsyncpa [#allocation16], 0 }
  0x1c   :  { %34 = vsyncpa [#allocation16 + $0x1], 0 }
  0x1d   :  { %35 = vsyncpa [#allocation5], 0  ;;  %s3534_s0 = smov 0   ;;  %s3536_s30 = smov 0  }
  0x1e   :  { %s3538_s20 = smov 0   ;;  %s3540_s21 = smov 0  }
  0x1f LB: > { %4355 = sst [smem:[#allocation24_spill]] %s3404_s30  ;;  %s3553_s1 = sadd.s32 4294967295, %s3412_s21   ;;  %s3412_s21 = sphi %s3540_s21, %s4425_s21   ;;  %s3408_s20 = sphi %s3538_s20, %s4428_s20   ;;  %s3404_s30 = sphi %s3536_s30, %s4427_s30   ;;  %s3400_s0 = sphi %s3534_s0, %s4426_s0  }
  0x20   : > { %4356 = sst [smem:[#allocation25_spill]] %s3408_s20  ;;  %s3556_s22 = sadd.s32 1, %s3412_s21  }
  0x21   : > { %4357 = sst [smem:[#allocation26_spill]] %s3553_s1  ;;  %s108_s2 = ssub.s32 %s3412_s21, %s3556_s22 }
  0x22   : > { %4358 = sst [smem:[#allocation27_spill]] %s3556_s22  ;;  %s111_s23 = sadd.s32 1, %s3408_s20 }
  0x23   : > { %p109_p0 = scmp.eq.s32.totalorder %s108_s2, 0  ;;  %p118_p1 = scmp.ne.s32.totalorder %s3408_s20, %s3404_s30 }
  0x24   : > { %p119_p2 = scmp.eq.s32.totalorder %s3412_s21, 0  ;;  %p124_p3 = scmp.ne.s32.totalorder %s3404_s30, %s3400_s0 }
  0x25   : > { %s3566_s24 = scalar_select %p109_p0, %s3408_s20, %s111_s23  }
  0x26   : > { %p3568_p4 = por %p119_p2, %p118_p1  ;;  %p4307_p5 = scmp.eq.s32.totalorder %s3553_s1, 0 }
  0x27   : > { %4359 = sst [smem:[#allocation28_spill]] %s3566_s24  ;;  %p2547_p6 = scmp.ge.s32.totalorder %s3412_s21, 1 }
  0x28   : > { %s4360_s25 = scalar_select %p3568_p4, 1, 0 }
  0x29   : > { %p536_p7 = scmp.lt.s32.totalorder %s3412_s21, 3  ;;  %p3577_p8 = por %p4307_p5, %p124_p3 }
  0x2a   : > { %s3414_s27 = smov [#allocation6]   ;;  %s3597_s2 = sand.u32 1, %s3408_s20  }
  0x2b   : > { %s4361_s3 = scalar_select %p3577_p8, 1, 0 }
  0x2c   : > { %p3582_p10 = pnand %p2547_p6, %p536_p7  ;;  %s561_s28 = sshll.u32 %s3414_s27, 4  ;;  %s562_s28 = int_to_ptr.vmem [resolvable:$true] %s561_s28 }
  0x2d   : > { %4362 = sst [smem:[#allocation29_spill]] %s4361_s3 }
  0x2e   : > { %s4363_s26 = scalar_select %p3582_p10, 1, 0 }
  0x2f   : > { %p2895_p11 = pneg %p3582_p10  ;;  %s4366_s22 = sld [smem:[#allocation33_spill]] }
  0x30   : > { %4364 = sst [smem:[#allocation30_spill]] %s4363_s26 }
  0x31   : > { %p3590_p12 = pnand %p2895_p11, %p4307_p5 }
  0x33   : > { %s4365_s29 = scalar_select %p3590_p12, 1, 0 }
  0x34   : > { %p3607_p1 = pneg %p3590_p12 }
  0x35   : > { %s3098_s19 = scalar_lea.hbm %s4366_s22, 256 }
  0x36   : > { %p3099_p0 = scmp.ne.s32.totalorder %s4366_s22, %s3098_s19  ;;  %p3105_p6 = scmp.lt.u32.totalorder %s3098_s19, %s4366_s22 }
  0x37   : > { %s4367_s27 = scalar_select %p3607_p1, 1, 0 }
  0x38   : > { %p3101_p2 = pnand %p3607_p1, %p3099_p0 }
  0x3a   : > { %p3102_p3 = pneg %p3101_p2 }
  0x3c   : > { %p3107_p7 = pnand %p3105_p6, %p3102_p3 }
  0x3e   : > { %3110 = shalt.err (!%p3107_p7)
}
  0x3f   : > { %s3111_s24 = scalar_lea.vmem %s562_s28, 256  ;;  %p3119_p13 = scmp.lt.s32.totalorder %s562_s28, %s562_s28 }
  0x40   : > { %p3112_p11 = scmp.ne.s32.totalorder %s562_s28, %s3111_s24  ;;  %p3120_p8 = scmp.lt.s32.totalorder %s3111_s24, %s3111_s24 }
  0x42   : > { %p3114_p9 = pnand %p3112_p11, %p3607_p1  ;;  %p3121_p10 = por %p3120_p8, %p3119_p13 }
  0x44   : > { %p3115_p5 = pneg %p3114_p9 }
  0x46   : > { %p3122_p4 = pnand %p3121_p10, %p3115_p5 }
  0x48   : > { %3125 = shalt.err (!%p3122_p4)
}
  0x49   : > { %s4310_s17 = smov 64   ;;  %s4312_s18 = smov 4  }
  0x4a   : > { %2901 = dma.hbm_to_vmem [thread:$0]  (!%p3590_p12), %s4366_s22, 256, %s562_s28, [#allocation7], %s4310_s17, %s4310_s17, %s4312_s18  }
  0x4b   : > { %s3627_s0 = sshll.u32 %s3597_s2, 6  ;;  %s3630_s23 = sshll.u32 %s3412_s21, 10 }
  0x4c   : > { %s4368_s14 = sld [smem:[#allocation35_spill]]  ;;  %s598_s11 = scalar_lea.vmem [#allocation9], %s3627_s0 }
  0x4d   : > { %s605_s10 = sshll.u32 %s598_s11, 4  ;;  %p4369_p4 = scmp.ne.s32.totalorder %s4360_s25, 0  ;;  %s3647_s10 = int_to_ptr.vmem [resolvable:$true] %s605_s10 }
  0x4e   : > { %p4370_p5 = scmp.lt.s32.totalorder %s3412_s21, 2  ;;  %s4372_s19 = sand.u32 1, %s3412_s21  }
  0x4f   : > { %s3651_s20 = scalar_lea.sflag [#allocation10], %s4372_s19 }
  0x50   : > { %p3643_p8 = pnand %p4370_p5, %p4369_p4 }
  0x52   : > { %s3636_s12 = scalar_lea.hbm %s4368_s14, %s3630_s23  ;;  %p3657_p10 = pneg %p3643_p8 }
  0x53   : > { %s4371_s28 = scalar_select %p3643_p8, 1, 0 }
  0x54   : > { %s3126_s16 = scalar_lea.hbm %s3636_s12, 1024  ;;  %s3131_s17 = scalar_lea.hbm %s4368_s14, 2048 }
  0x55   : > { %p3127_p9 = scmp.ne.s32.totalorder %s3636_s12, %s3126_s16  ;;  %p3132_p2 = scmp.lt.u32.totalorder %s3636_s12, %s4368_s14 }
  0x56   : > { %s4373_s24 = scalar_select %p3657_p10, 1, 0 }
  0x57   : > { %p3129_p13 = pnand %p3657_p10, %p3127_p9  ;;  %p3133_p3 = scmp.lt.u32.totalorder %s3131_s17, %s3126_s16 }
  0x58   : > { %p3135_p7 = scmp.lt.u32.totalorder %s3126_s16, %s3636_s12 }
  0x59   : > { %p3130_p0 = pneg %p3129_p13  ;;  %p3134_p6 = por %p3133_p3, %p3132_p2 }
  0x5b   : > { %p3136_p11 = por %p3135_p7, %p3134_p6 }
  0x5d   : > { %p3137_p4 = pnand %p3136_p11, %p3130_p0 }
  0x5f   : > { %3140 = shalt.err (!%p3137_p4)
}
  0x60   : > { %s3141_s19 = scalar_lea.vmem %s3647_s10, 1024  ;;  %s3417_s11 = smov [#allocation9]  }
  0x61   : > { %p3142_p5 = scmp.ne.s32.totalorder %s3647_s10, %s3141_s19  ;;  %s3146_s25 = sshll.u32 %s3417_s11, 4  ;;  %s3147_s25 = int_to_ptr.vmem [resolvable:$false] %s3146_s25 }
  0x62   : > { %s3148_s22 = scalar_lea.vmem %s3147_s25, 2048  ;;  %p3149_p12 = scmp.lt.s32.totalorder %s3647_s10, %s3147_s25 }
  0x63   : > { %p3144_p9 = pnand %p3142_p5, %p3657_p10  ;;  %p3150_p1 = scmp.lt.s32.totalorder %s3148_s22, %s3141_s19 }
  0x65   : > { %p3145_p13 = pneg %p3144_p9  ;;  %p3151_p2 = por %p3150_p1, %p3149_p12 }
  0x67   : > { %p3152_p3 = pnand %p3151_p2, %p3145_p13 }
  0x69   : > { %3155 = shalt.err (!%p3152_p3)
}
  0x6a   : > { %s4374_s17 = smov 4   ;;  %s4375_s18 = smov 64  }
  0x6b   : > { %2908 = dma.hbm_to_vmem [thread:$0]  (!%p3643_p8), %s3636_s12, 1024, %s3647_s10, %s3651_s20, %s4375_s18, %s4375_s18, %s4374_s17  }
  0x6c   : > { %s4376_s7 = sld [smem:[#allocation39_spill]]  ;;  %s653_s25 = scalar_lea.vmem [#allocation12], %s3627_s0 }
  0x6d   : > { %s660_s22 = sshll.u32 %s653_s25, 4  ;;  %s4377_s14 = sand.u32 1, %s3412_s21   ;;  %s3691_s22 = int_to_ptr.vmem [resolvable:$true] %s660_s22 }
  0x6e   : > { %s3695_s9 = scalar_lea.sflag [#allocation13], %s4377_s14 }
  0x6f   : > { %4378 = sst [smem:[#allocation31_spill]] %s3695_s9 }
  0x72   : > { %s3688_s19 = scalar_lea.hbm %s4376_s7, %s3630_s23  ;;  %s3161_s16 = scalar_lea.hbm %s4376_s7, 2048 }
  0x73   : > { %s3156_s8 = scalar_lea.hbm %s3688_s19, 1024  ;;  %p3162_p6 = scmp.lt.u32.totalorder %s3688_s19, %s4376_s7 }
  0x74   : > { %p3157_p12 = scmp.ne.s32.totalorder %s3688_s19, %s3156_s8  ;;  %p3163_p7 = scmp.lt.u32.totalorder %s3161_s16, %s3156_s8 }
  0x75   : > { %p3165_p4 = scmp.lt.u32.totalorder %s3156_s8, %s3688_s19 }
  0x76   : > { %p3159_p1 = pnand %p3157_p12, %p3657_p10  ;;  %p3164_p11 = por %p3163_p7, %p3162_p6 }
  0x78   : > { %p3160_p0 = pneg %p3159_p1  ;;  %p3166_p5 = por %p3165_p4, %p3164_p11 }
  0x7a   : > { %p3167_p9 = pnand %p3166_p5, %p3160_p0 }
  0x7c   : > { %3170 = shalt.err (!%p3167_p9)
}
  0x7d   : > { %s3171_s14 = scalar_lea.vmem %s3691_s22, 1024  ;;  %s3418_s25 = smov [#allocation12]  }
  0x7e   : > { %p3172_p13 = scmp.ne.s32.totalorder %s3691_s22, %s3171_s14  ;;  %s3176_s10 = sshll.u32 %s3418_s25, 4  ;;  %s3177_s10 = int_to_ptr.vmem [resolvable:$false] %s3176_s10 }
  0x7f   : > { %s3178_s6 = scalar_lea.vmem %s3177_s10, 2048  ;;  %p3179_p12 = scmp.lt.s32.totalorder %s3691_s22, %s3177_s10 }
  0x80   : > { %p3174_p2 = pnand %p3172_p13, %p3657_p10  ;;  %p3180_p1 = scmp.lt.s32.totalorder %s3178_s6, %s3171_s14 }
  0x82   : > { %p3175_p3 = pneg %p3174_p2  ;;  %p3181_p6 = por %p3180_p1, %p3179_p12 }
  0x84   : > { %p3182_p7 = pnand %p3181_p6, %p3175_p3 }
  0x86   : > { %3185 = shalt.err (!%p3182_p7)
}
  0x87   : > { %2914 = dma.hbm_to_vmem [thread:$0]  (!%p3643_p8), %s3688_s19, 1024, %s3691_s22, %s3695_s9, %s4375_s18, %s4375_s18, %s4374_s17  }
  0x88   : > { %s3419_s8 = smov [#allocation3]   ;;  %s4379_s25 = sld [smem:[#allocation32_spill]] }
  0x89   : > { %s548_s12 = sshll.u32 %s3419_s8, 4  ;;  %p4380_p11 = scmp.ne.s32.totalorder %s4367_s27, 0  ;;  %s549_s12 = int_to_ptr.vmem [resolvable:$true] %s548_s12 }
  0x8e   : > { %s3186_s14 = scalar_lea.hbm %s4379_s25, 256 }
  0x8f   : > { %p3187_p0 = scmp.ne.s32.totalorder %s4379_s25, %s3186_s14  ;;  %p3193_p9 = scmp.lt.u32.totalorder %s3186_s14, %s4379_s25 }
  0x91   : > { %p3189_p4 = pnand %p3187_p0, %p4380_p11 }
  0x93   : > { %p3190_p5 = pneg %p3189_p4 }
  0x95   : > { %p3195_p13 = pnand %p3193_p9, %p3190_p5 }
  0x97   : > { %3198 = shalt.err (!%p3195_p13)
}
  0x98   : > { %s3199_s19 = scalar_lea.vmem %s549_s12, 256  ;;  %p3207_p1 = scmp.lt.s32.totalorder %s549_s12, %s549_s12 }
  0x99   : > { %p3200_p2 = scmp.ne.s32.totalorder %s549_s12, %s3199_s19  ;;  %p3208_p6 = scmp.lt.s32.totalorder %s3199_s19, %s3199_s19 }
  0x9b   : > { %p3202_p3 = pnand %p3200_p2, %p4380_p11  ;;  %p3209_p7 = por %p3208_p6, %p3207_p1 }
  0x9d   : > { %p3203_p12 = pneg %p3202_p3 }
  0x9f   : > { %p3210_p8 = pnand %p3209_p7, %p3203_p12 }
  0xa1   : > { %3213 = shalt.err (!%p3210_p8)
}
  0xa2   : > { %s3420_s22 = smov 128   ;;  %s3421_s4 = smov 8  }
  0xa3   : > { %p4381_p0 = scmp.ne.s32.totalorder %s4365_s29, 0  ;;  %s2555_s16 = sshll.u32 %s3597_s2, 7 }
  0xa4   : > { %s3422_s11 = smov [#allocation8]   ;;  %s2654_s10 = sshll.u32 %s3412_s21, 11 }
  0xa5   : > { %2898 = dma.hbm_to_vmem [thread:$0]  (!%p4381_p0), %s4379_s25, 256, %s549_s12, [#allocation4], %s3420_s22, %s3420_s22, %s3421_s4  }
  0xa6   : > { %s574_s14 = sshll.u32 %s3422_s11, 4  ;;  %s4382_s3 = sld [smem:[#allocation34_spill]]  ;;  %s575_s14 = int_to_ptr.vmem [resolvable:$true] %s574_s14 }
  0xac   : > { %s3214_s30 = scalar_lea.hbm %s4382_s3, 256 }
  0xad   : > { %p3215_p8 = scmp.ne.s32.totalorder %s4382_s3, %s3214_s30  ;;  %p3221_p9 = scmp.lt.u32.totalorder %s3214_s30, %s4382_s3 }
  0xaf   : > { %p3217_p4 = pnand %p3215_p8, %p4380_p11 }
  0xb1   : > { %p3218_p5 = pneg %p3217_p4 }
  0xb3   : > { %p3223_p13 = pnand %p3221_p9, %p3218_p5 }
  0xb5   : > { %3226 = shalt.err (!%p3223_p13)
}
  0xb6   : > { %s3227_s12 = scalar_lea.vmem %s575_s14, 256  ;;  %p3235_p1 = scmp.lt.s32.totalorder %s575_s14, %s575_s14 }
  0xb7   : > { %p3228_p2 = scmp.ne.s32.totalorder %s575_s14, %s3227_s12  ;;  %p3236_p6 = scmp.lt.s32.totalorder %s3227_s12, %s3227_s12 }
  0xb9   : > { %p3230_p3 = pnand %p3228_p2, %p4380_p11  ;;  %p3237_p7 = por %p3236_p6, %p3235_p1 }
  0xbb   : > { %p3231_p12 = pneg %p3230_p3 }
  0xbd   : > { %p3238_p10 = pnand %p3237_p7, %p3231_p12 }
  0xbf   : > { %3241 = shalt.err (!%p3238_p10)
}
  0xc0   : > { %2904 = dma.hbm_to_vmem [thread:$0]  (!%p4381_p0), %s4382_s3, 256, %s575_s14, [#allocation7], %s3420_s22, %s3420_s22, %s3421_s4  }
  0xc1   : > { %s4383_s5 = sld [smem:[#allocation37_spill]]  ;;  %s625_s26 = scalar_lea.vmem [#allocation11], %s2555_s16 }
  0xc2   : > { %s632_s27 = sshll.u32 %s625_s26, 4  ;;  %p4384_p11 = scmp.ne.s32.totalorder %s4373_s24, 0  ;;  %s3771_s27 = int_to_ptr.vmem [resolvable:$true] %s632_s27 }
  0xc7   : > { %s3769_s1 = scalar_lea.hbm %s4383_s5, %s2654_s10  ;;  %s3247_s11 = scalar_lea.hbm %s4383_s5, 4096 }
  0xc8   : > { %s3242_s29 = scalar_lea.hbm %s3769_s1, 2048  ;;  %p3248_p0 = scmp.lt.u32.totalorder %s3769_s1, %s4383_s5 }
  0xc9   : > { %p3243_p10 = scmp.ne.s32.totalorder %s3769_s1, %s3242_s29  ;;  %p3249_p5 = scmp.lt.u32.totalorder %s3247_s11, %s3242_s29 }
  0xca   : > { %p3251_p13 = scmp.lt.u32.totalorder %s3242_s29, %s3769_s1 }
  0xcb   : > { %p3245_p8 = pnand %p3243_p10, %p4384_p11  ;;  %p3250_p9 = por %p3249_p5, %p3248_p0 }
  0xcd   : > { %p3246_p4 = pneg %p3245_p8  ;;  %p3252_p2 = por %p3251_p13, %p3250_p9 }
  0xcf   : > { %p3253_p3 = pnand %p3252_p2, %p3246_p4 }
  0xd1   : > { %3256 = shalt.err (!%p3253_p3)
}
  0xd2   : > { %s3257_s16 = scalar_lea.vmem %s3771_s27, 2048  ;;  %s3423_s6 = smov [#allocation11]  }
  0xd3   : > { %p3258_p12 = scmp.ne.s32.totalorder %s3771_s27, %s3257_s16  ;;  %s3262_s19 = sshll.u32 %s3423_s6, 4  ;;  %s3263_s19 = int_to_ptr.vmem [resolvable:$false] %s3262_s19 }
  0xd4   : > { %s3264_s12 = scalar_lea.vmem %s3263_s19, 4096  ;;  %p3265_p7 = scmp.lt.s32.totalorder %s3771_s27, %s3263_s19 }
  0xd5   : > { %p3260_p1 = pnand %p3258_p12, %p4384_p11  ;;  %p3266_p10 = scmp.lt.s32.totalorder %s3264_s12, %s3257_s16 }
  0xd7   : > { %p3261_p6 = pneg %p3260_p1  ;;  %p3267_p8 = por %p3266_p10, %p3265_p7 }
  0xd9   : > { %p3268_p0 = pnand %p3267_p8, %p3261_p6 }
  0xdb   : > { %3271 = shalt.err (!%p3268_p0)
}
  0xdc   : > { %p4385_p4 = scmp.ne.s32.totalorder %s4371_s28, 0  ;;  %s4386_s13 = sld [smem:[#allocation45_spill]] }
  0xdd   : > { %s704_s21 = scalar_lea.vmem [#allocation14], %s3627_s0 }
  0xde   : > { %2911 = dma.hbm_to_vmem [thread:$0]  (!%p4385_p4), %s3769_s1, 2048, %s3771_s27, %s3651_s20, %s3420_s22, %s3420_s22, %s3421_s4  }
  0xdf   : > { %s711_s26 = sshll.u32 %s704_s21, 4  ;;  %s3805_s26 = int_to_ptr.vmem [resolvable:$true] %s711_s26 }
  0xe2   : > { %s3802_s30 = scalar_lea.hbm %s4386_s13, %s3630_s23  ;;  %s3277_s22 = scalar_lea.hbm %s4386_s13, 2048 }
  0xe3   : > { %s3272_s29 = scalar_lea.hbm %s3802_s30, 1024  ;;  %p3278_p2 = scmp.lt.u32.totalorder %s3802_s30, %s4386_s13 }
  0xe4   : > { %p3273_p5 = scmp.ne.s32.totalorder %s3802_s30, %s3272_s29  ;;  %p3279_p3 = scmp.lt.u32.totalorder %s3277_s22, %s3272_s29 }
  0xe5   : > { %p3281_p1 = scmp.lt.u32.totalorder %s3272_s29, %s3802_s30 }
  0xe6   : > { %p3275_p9 = pnand %p3273_p5, %p4384_p11  ;;  %p3280_p12 = por %p3279_p3, %p3278_p2 }
  0xe8   : > { %p3276_p13 = pneg %p3275_p9  ;;  %p3282_p6 = por %p3281_p1, %p3280_p12 }
  0xea   : > { %p3283_p7 = pnand %p3282_p6, %p3276_p13 }
  0xec   : > { %3286 = shalt.err (!%p3283_p7)
}
  0xed   : > { %s3287_s27 = scalar_lea.vmem %s3805_s26, 1024  ;;  %s3424_s8 = smov [#allocation14]  }
  0xee   : > { %p3288_p10 = scmp.ne.s32.totalorder %s3805_s26, %s3287_s27  ;;  %s3292_s11 = sshll.u32 %s3424_s8, 4  ;;  %s3293_s11 = int_to_ptr.vmem [resolvable:$false] %s3292_s11 }
  0xef   : > { %s3294_s14 = scalar_lea.vmem %s3293_s11, 2048  ;;  %p3295_p5 = scmp.lt.s32.totalorder %s3805_s26, %s3293_s11 }
  0xf0   : > { %p3290_p8 = pnand %p3288_p10, %p4384_p11  ;;  %p3296_p9 = scmp.lt.s32.totalorder %s3294_s14, %s3287_s27 }
  0xf2   : > { %p3291_p0 = pneg %p3290_p8  ;;  %p3297_p2 = por %p3296_p9, %p3295_p5 }
  0xf4   : > { %p3298_p3 = pnand %p3297_p2, %p3291_p0 }
  0xf6   : > { %3301 = shalt.err (!%p3298_p3)
}
  0xf7   : > { %s4387_s10 = sld [smem:[#allocation31_spill]]  ;;  %s4388_s19 = sld [smem:[#allocation47_spill]] }
  0xf8   : > { %s731_s9 = scalar_lea.vmem [#allocation15], %s3627_s0  ;;  %s728_s21 = scalar_lea.sflag [#allocation16], %s3597_s2 }
  0xf9   : > { %s738_s15 = sshll.u32 %s731_s9, 4  ;;  %s3839_s15 = int_to_ptr.vmem [resolvable:$true] %s738_s15 }
  0xfd   : > { %2917 = dma.hbm_to_vmem [thread:$0]  (!%p4385_p4), %s3802_s30, 1024, %s3805_s26, %s4387_s10, %s4375_s18, %s4375_s18, %s4374_s17  }
  0xfe   : > { %s3836_s12 = scalar_lea.hbm %s4388_s19, %s3630_s23  ;;  %s3307_s7 = scalar_lea.hbm %s4388_s19, 2048 }
  0xff   : > { %s3302_s29 = scalar_lea.hbm %s3836_s12, 1024  ;;  %p3308_p6 = scmp.lt.u32.totalorder %s3836_s12, %s4388_s19 }
 0x100   : > { %p3303_p13 = scmp.ne.s32.totalorder %s3836_s12, %s3302_s29  ;;  %p3309_p7 = scmp.lt.u32.totalorder %s3307_s7, %s3302_s29 }
 0x101   : > { %p3311_p8 = scmp.lt.u32.totalorder %s3302_s29, %s3836_s12 }
 0x102   : > { %p3305_p12 = pnand %p3303_p13, %p4384_p11  ;;  %p3310_p10 = por %p3309_p7, %p3308_p6 }
 0x104   : > { %p3306_p1 = pneg %p3305_p12  ;;  %p3312_p0 = por %p3311_p8, %p3310_p10 }
 0x106   : > { %p3313_p5 = pnand %p3312_p0, %p3306_p1 }
 0x108   : > { %3316 = shalt.err (!%p3313_p5)
}
 0x109   : > { %s3317_s0 = scalar_lea.vmem %s3839_s15, 1024  ;;  %s3425_s22 = smov [#allocation15]  }
 0x10a   : > { %p3318_p9 = scmp.ne.s32.totalorder %s3839_s15, %s3317_s0  ;;  %s3322_s4 = sshll.u32 %s3425_s22, 4  ;;  %s3323_s4 = int_to_ptr.vmem [resolvable:$false] %s3322_s4 }
 0x10b   : > { %s3324_s1 = scalar_lea.vmem %s3323_s4, 2048  ;;  %p3325_p13 = scmp.lt.s32.totalorder %s3839_s15, %s3323_s4 }
 0x10c   : > { %p3320_p2 = pnand %p3318_p9, %p4384_p11  ;;  %p3326_p12 = scmp.lt.s32.totalorder %s3324_s1, %s3317_s0 }
 0x10e   : > { %p3321_p3 = pneg %p3320_p2  ;;  %p3327_p6 = por %p3326_p12, %p3325_p13 }
 0x110   : > { %p3328_p7 = pnand %p3327_p6, %p3321_p3 }
 0x112   : > { %3331 = shalt.err (!%p3328_p7)
}
 0x113   : > { %2920 = dma.hbm_to_vmem [thread:$0]  (!%p4385_p4), %s3836_s12, 1024, %s3839_s15, %s728_s21, %s4375_s18, %s4375_s18, %s4374_s17  }
 0x114   : > { %s4389_s24 = sld [smem:[#allocation30_spill]] }
 0x11a   : > { %p4390_p11 = scmp.ne.s32.totalorder %s4389_s24, 0 }
 0x11b   : > { %s4391_s27 = sld [smem:[#allocation26_spill]] (!%p4390_p11) }
 0x11c   : > { %756 = sbr.rel (%p4390_p11) target bundleno = 4773 (0x12a5), region = 96 }
 0x121   : > { %p4392_p1 = scmp.eq.s32.totalorder (!%p4390_p11), %s4391_s27, 0 }
 0x123   : > { %3375 = dma.done.wait (%p4392_p1), [#allocation4], 256   ;;  %p4393_p10 = pmov %p4392_p1 }
 0x124   : > { %p4394_p8 = pmov %p4392_p1 }
 0x125   : > { %3377 = vsyncadd (%p4393_p10), [#allocation4], 4294967040 }
 0x126   : > { %3379 = dma.done.wait (%p4394_p8), [#allocation7], 512   ;;  %p4395_p0 = pmov %p4392_p1 }
 0x127   : > { %s4396_s2 = sld [smem:[#allocation24_spill]]  ;;  %s4397_s28 = sld [smem:[#allocation29_spill]] }
 0x128   : > { %3381 = vsyncadd (%p4395_p0), [#allocation7], 4294966784  ;;  %s770_s8 = sand.u32 1, %s4391_s27  }
 0x129   : > { %s771_s11 = scalar_lea.sflag [#allocation10], %s770_s8 }
 0x12d   : > { %s772_s17 = sand.u32 1, %s4396_s2   ;;  %p4398_p4 = scmp.ne.s32.totalorder %s4397_s28, 0 }
 0x12e   : > { %s2571_s18 = sshll.u32 %s772_s17, 6 }
 0x12f   : > { %s3880_s14 = scalar_lea.vmem [#allocation9], %s2571_s18 }
 0x130   : > { %3383 = dma.done.wait (%p4398_p4), %s771_s11, 3072  }
 0x131   : > { %3385 = vsyncadd (%p4398_p4), %s771_s11, 4294964224  ;;  %s2572_s10 = sshll.u32 %s772_s17, 7  ;;  %s789_s6 = scalar_lea.sflag [#allocation13], %s770_s8 }
 0x132   : > { %s3886_s16 = scalar_lea.vmem [#allocation11], %s2572_s10  ;;  %s3888_s12 = scalar_lea.vmem [#allocation12], %s2571_s18 }
 0x133   : > { %3387 = dma.done.wait (%p4398_p4), %s789_s6, 2048  }
 0x134   : > { %3389 = vsyncadd (%p4398_p4), %s789_s6, 4294965248  ;;  %s3894_s9 = scalar_lea.vmem [#allocation14], %s2571_s18  ;;  %s807_s15 = scalar_lea.sflag [#allocation16], %s772_s17 }
 0x135   : > { %s3896_s21 = scalar_lea.vmem [#allocation15], %s2571_s18 }
 0x136   : > { %3391 = dma.done.wait (%p4398_p4), %s807_s15, 1024  }
 0x137   : > { %3393 = vsyncadd (%p4398_p4), %s807_s15, 4294966272  ;;  %p908_p5 = scmp.lt.s32.totalorder %s4391_s27, 1  ;;  %s4400_s4 = sld [smem:[#allocation38_spill]] }
 0x138   : > { %s4402_s11 = sld [smem:[#allocation41_spill]]  ;;  %s4403_s30 = sld [smem:[#allocation42_spill]] }
 0x139   : > { %s3904_s29 = scalar_select %p908_p5, %s4391_s27, 1 }
 0x13a   : > { %s4404_s23 = sld [smem:[#allocation43_spill]]  ;;  %s4406_s24 = sld [smem:[#allocation46_spill]] }
 0x13b   : > { %s2576_s20 = sshll.u32 %s3904_s29, 1  ;;  %s4407_s17 = sld [smem:[#allocation48_spill]] }
 0x13c   : > { %p4408_p9 = scmp.ne.s32.totalorder %s4391_s27, 0 }
 0x13d   : > { %s3914_s1 = scalar_lea.vmem %s4400_s4, %s2576_s20  ;;  %s4405_s20 = sld [smem:[#allocation44_spill]]  ;;  %v941_v0 = vld [vmem:[#allocation3] sm:$0xff] (!%p4408_p9)  ;;  %v942_v1 = vld [vmem:[#allocation3 + $0x8] sm:$0xff] (!%p4408_p9) }
 0x13e   : > { %s920_s10 = scalar_lea.vmem %s4402_s11, %s3904_s29  ;;  %s923_s26 = scalar_lea.vmem %s4403_s30, %s3904_s29  ;;  %943 = vst [vmem:[#allocation2] sm:$0xff] (!%p4408_p9), %v941_v0  ;;  %944 = vst [vmem:[#allocation2 + $0x8] sm:$0xff] (!%p4408_p9), %v942_v1 }
 0x13f   : > { %940 = sbr.rel (%p4408_p9) target bundleno = 326 (0x146), region = 132 }
 0x140   : > { %s926_s5 = scalar_lea.vmem %s4404_s23, %s3904_s29  ;;  %s932_s2 = scalar_lea.vmem %s4406_s24, %s3904_s29 }
 0x141   : > { %s935_s18 = scalar_lea.vmem %s4407_s17, %s3904_s29 }
 0x143   : > { %s929_s22 = scalar_lea.vmem %s4405_s20, %s3904_s29 }
 0x146 PF: > { %v2992_v2 = vld [vmem:[%s3886_s16 + $0x4] ss:$8 sps:$4 sm:$0xff]   ;;  %v2994_v3 = vld [vmem:[%s3886_s16] ss:$8 sps:$4 sm:$0xff]   ;;  %v3426_v4 = vmov 0.0   ;;  %v3427_v5 = vmov 0   ;;  %v1086_v33 = vlaneseq }
 0x147   : > { %2725 = vmatprep.subr.bf16.mxu0 %v3426_v4  ;;  %1220 = vmatprep.mubr.bf16.mxu1 %v3427_v5  ;;  %v2995_v6 = vld [vmem:[%s3886_s16 + $0x14] ss:$8 sps:$4 sm:$0xff]   ;;  %vm3428_vm0 = vmmov 0   ;;  %v2997_v7 = vld [vmem:[%s3886_s16 + $0x10] ss:$8 sps:$4 sm:$0xff]   ;;  %v3001_v9 = vld [vmem:[%s3880_s14] sm:$0xff]  }
 0x148   : > { %1188 = vmatprep.subr.bf16.mxu1 %v2992_v2  ;;  %2741 = vmatprep.mubr.msk.bf16.mxu0 %vm3428_vm0, %v3426_v4  ;;  %v2998_v8 = vld [vmem:[%s3886_s16 + $0x24] ss:$8 sps:$4 sm:$0xff]   ;;  %v3000_v10 = vld [vmem:[%s3886_s16 + $0x20] ss:$8 sps:$4 sm:$0xff]   ;;  %v3002_v12 = vld [vmem:[%s3886_s16 + $0x34] ss:$8 sps:$4 sm:$0xff]  }
 0x149   : > { %1189 = vmatpush1.bf16.msra.mxu1 %v2994_v3  ;;  %2726 = vmatpush3.bf16.msra.mxu0 %v3001_v9  ;;  %v3005_v11 = vld [vmem:[%s3880_s14 + $0x8] sm:$0xff]   ;;  %v3009_v13 = vld [vmem:[%s3880_s14 + $0x10] sm:$0xff]   ;;  %v3013_v16 = vld [vmem:[%s3880_s14 + $0x18] sm:$0xff]   ;;  %v1087_v34 = vshrl.u32 %v1086_v33, 7  ;;  %s4409_s19 = sld [smem:[#allocation36_spill]]  ;;  %vm1246_vm1 = vcmask 261120  }
 0x14a   : > { %1190 = vmatprep.subr.bf16.mxu1 %v2995_v6  ;;  %2727 = vmatprep.subr.bf16.mxu0 %v3426_v4  ;;  %v3004_v14 = vld [vmem:[%s3886_s16 + $0x30] ss:$8 sps:$4 sm:$0xff]   ;;  %v3006_v15 = vld [vmem:[%s3886_s16 + $0x44] ss:$8 sps:$4 sm:$0xff]   ;;  %v3008_v17 = vld [vmem:[%s3886_s16 + $0x40] ss:$8 sps:$4 sm:$0xff]  }
 0x14b   : > { %v3010_v18 = vld [vmem:[%s3886_s16 + $0x54] ss:$8 sps:$4 sm:$0xff]   ;;  %v3017_v19 = vld [vmem:[%s3880_s14 + $0x20] sm:$0xff]   ;;  %v3012_v20 = vld [vmem:[%s3886_s16 + $0x50] ss:$8 sps:$4 sm:$0xff]   ;;  %v1088_v35 = vsub.s32 0, %v1087_v34 }
 0x14c   : > { %v3014_v21 = vld [vmem:[%s3886_s16 + $0x64] ss:$8 sps:$4 sm:$0xff]   ;;  %v3016_v22 = vld [vmem:[%s3886_s16 + $0x60] ss:$8 sps:$4 sm:$0xff]   ;;  %v3018_v24 = vld [vmem:[%s3886_s16 + $0x74] ss:$8 sps:$4 sm:$0xff]  }
 0x14d   : > { %1191 = vmatpush1.bf16.msra.mxu1 %v2997_v7  ;;  %2728 = vmatpush3.bf16.msra.mxu0 %v3005_v11  ;;  %v3021_v23 = vld [vmem:[%s3880_s14 + $0x28] sm:$0xff]   ;;  %v3023_v25 = vld [vmem:[%s3880_s14 + $0x30] sm:$0xff]   ;;  %v3022_v27 = vld [vmem:[#allocation6] sm:$0xff]   ;;  %v1092_v37 = vsub.s32 1, %v1087_v34  ;;  %s3431_s23 = smov 32   ;;  %vm1782_vm2 = vcmask 523264  }
 0x14e   : > { %1192 = vmatprep.subr.bf16.mxu1 %v2998_v8  ;;  %2729 = vmatprep.subr.bf16.mxu0 %v3426_v4  ;;  %v3020_v26 = vld [vmem:[%s3886_s16 + $0x70] ss:$8 sps:$4 sm:$0xff]   ;;  %v3979_v29 = vld [vmem:[#allocation2] sm:$0xff]  ;;  %v3981_v30 = vld [vmem:[#allocation2 + $0x8] sm:$0xff]  ;;  %s3430_s16 = smov 64   ;;  %vm1785_vm3 = vcmask 785408  }
 0x14f   : > { %v3024_v28 = vld [vmem:[%s3880_s14 + $0x38] sm:$0xff]   ;;  %v947_v31 = vpack.c.bf16 %v3981_v30, %v3979_v29  ;;  %v3025_v32 = vld [vmem:[#allocation6 + $0x8] sm:$0xff]   ;;  %v1084_v36 = vld [vmem:[%s3914_s1] sm:$0x3]  ;;  %s4410_s27 = scalar_lea.vmem %s4409_s19, %s3904_s29  ;;  %s3429_s14 = smov 96  }
 0x150   : > { %v1089_v38 = vrot.slane %v1084_v36, %v1088_v35  ;;  %v1093_v40 = vrot.slane %v1084_v36, %v1092_v37  ;;  %v2578_v42 = vld [vmem:[%s4410_s27] ss:$0 sm:$0xff]  ;;  %v4022_v9 = vld [vmem:[#allocation8] sm:$0xff]  ;;  %v4024_v11 = vld [vmem:[#allocation8 + $0x8] sm:$0xff]  ;;  %s4411_s8 = sld [smem:[#allocation40_spill]] }
 0x151   : > { %1193 = vmatpush1.bf16.msra.mxu1 %v3000_v10  ;;  %2730 = vmatpush3.bf16.msra.mxu0 %v3009_v13  ;;  %s4419_s3 = sld [smem:[#allocation26_spill]] }
 0x152   : > { %1194 = vmatprep.subr.bf16.mxu1 %v3002_v12  ;;  %2731 = vmatprep.subr.bf16.mxu0 %v3426_v4 }
 0x155   : > { %1195 = vmatpush1.bf16.msra.mxu1 %v3004_v14  ;;  %2732 = vmatpush3.bf16.msra.mxu0 %v3013_v16 }
 0x156   : > { %1196 = vmatprep.subr.bf16.mxu1 %v3006_v15  ;;  %2733 = vmatprep.subr.bf16.mxu0 %v3426_v4  ;;  %s4412_s11 = scalar_lea.vmem %s4411_s8, %s3904_s29 }
 0x157   : > { %p2644_p2 = scmp.ne.s32.totalorder %s4419_s3, 1 }
 0x158   : > { %s4420_s19 = sld [smem:[#allocation49_spill]] (!%p2644_p2) }
 0x159   : > { %1197 = vmatpush1.bf16.msra.mxu1 %v3008_v17  ;;  %2734 = vmatpush3.bf16.msra.mxu0 %v3017_v19 }
 0x15a   : > { %1198 = vmatprep.subr.bf16.mxu1 %v3010_v18  ;;  %2735 = vmatprep.subr.bf16.mxu0 %v3426_v4 }
 0x15d   : > { %1199 = vmatpush1.bf16.msra.mxu1 %v3012_v20  ;;  %2736 = vmatpush3.bf16.msra.mxu0 %v3021_v23 }
 0x15e   : > { %1200 = vmatprep.subr.bf16.mxu1 %v3014_v21  ;;  %2737 = vmatprep.subr.bf16.mxu0 %v3426_v4 }
 0x161   : > { %1201 = vmatpush1.bf16.msra.mxu1 %v3016_v22  ;;  %2738 = vmatpush3.bf16.msra.mxu0 %v3023_v25 }
 0x162   : > { %1202 = vmatprep.subr.bf16.mxu1 %v3018_v24  ;;  %2739 = vmatprep.subr.bf16.mxu0 %v3426_v4 }
 0x165   : > { %1203 = vmatpush1.bf16.msra.mxu1 %v3020_v26  ;;  %2740 = vmatpush3.bf16.msra.mxu0 %v3024_v28 }
 0x166   : > { %2769 = vmatprep.subr.bf16.mxu1 %v3426_v4  ;;  %2745 = vmatprep.subr.bf16.mxu0 %v3426_v4 }
 0x168   : > { %1221 = vmatmul.mubr.bf16.vlgmr.msra.gmra.mrb[0].mxu1 %v3022_v27  ;;  %2742 = vmatmul.mubr.bf16.vlgmr.msra.gmra.mrb[0].mxu0 %v947_v31 }
 0x169   : > { %1230 = vmatprep.mubr.bf16.mxu1 %v3427_v5  ;;  %2749 = vmatprep.mubr.msk.bf16.mxu0 %vm3428_vm0, %v3426_v4 }
 0x170   : > { %1231 = vmatmul.mubr.bf16.gmra.mrb[4].mxu1 %v3025_v32 }
 0x171   : > { %2773 = vmatprep.mubr.msk.bf16.mxu1 %vm3428_vm0, %v3426_v4 }
 0x23b   : > { %v1222_v39 = vpop.f32.mrb[0].mxu1  ;;  %v1059_v47 = vpop.f32.mrb[0].mxu0 }
 0x23c   : > { %v1224_v41 = vpop.f32.mrb[1].mxu1  ;;  %v1223_v44 = vadd.f32 %v1222_v39, %v1089_v38  ;;  %v1060_v50 = vadd.f32 %v2578_v42, %v1059_v47  ;;  %v2743_v51 = vpop.f32.mrb[1].mxu0 }
 0x23d   : > { %v1226_v43 = vpop.f32.mrb[2].mxu1  ;;  %v1225_v48 = vadd.f32 %v1224_v41, %v1093_v40  ;;  %v1062_v53 = vpop.f32.mrb[2].mxu0 }
 0x23e   : > { %v1227_v45 = vadd.f32 %v1226_v43, %v1089_v38  ;;  %v1228_v46 = vpop.f32.mrb[3].mxu1  ;;  %v1066_v55 = vmul.f32 0.25, %v1060_v50  ;;  %v1063_v56 = vadd.f32 %v2578_v42, %v1062_v53  ;;  %v2744_v57 = vpop.f32.mrb[3].mxu0 }
 0x23f   : > { %v1229_v49 = vadd.f32 %v1228_v46, %v1093_v40 }
 0x240   : > { %v3998_v52 = vpack.c.bf16 %v1227_v45, %v1223_v44  ;;  %v1067_v60 = vmul.f32 0.25, %v1063_v56 }
 0x241   : > { %v4000_v54 = vpack.c.bf16 %v1229_v49, %v1225_v48 }
 0x242   : > { %v1251_v58 = vsel %vm1246_vm1, %v3998_v52, 0  ;;  %v4005_v63 = vpack.c.bf16 %v1067_v60, %v1066_v55 }
 0x243   : > { %v1232_v59 = vpop.f32.mrb[4].mxu1  ;;  %2746 = vmatpush3.bf16.xpose.msra.mxu0 %v1251_v58 }
 0x244   : > { %v1234_v61 = vpop.f32.mrb[5].mxu1  ;;  %2747 = vmatprep.subr.bf16.mxu0 %v3426_v4  ;;  %v1233_v0 = vadd.f32 %v1232_v59, %v1089_v38 }
 0x245   : > { %v1236_v62 = vpop.f32.mrb[6].mxu1  ;;  %v1235_v3 = vadd.f32 %v1234_v61, %v1093_v40 }
 0x246   : > { %v1237_v1 = vadd.f32 %v1236_v62, %v1089_v38  ;;  %v1238_v2 = vpop.f32.mrb[7].mxu1 }
 0x247   : > { %v1239_v5 = vadd.f32 %v1238_v2, %v1093_v40 }
 0x248   : > { %v4007_v6 = vpack.c.bf16 %v1237_v1, %v1233_v0 }
 0x249   : > { %v4009_v7 = vpack.c.bf16 %v1239_v5, %v1235_v3 }
 0x24a   : > { %v1254_v8 = vsel %vm1246_vm1, %v4007_v6, 0 }
 0x24b   : > { %2748 = vmatpush3.bf16.xpose.msra.mxu0 %v1254_v8 }
 0x24c   : > { %2753 = vmatprep.subr.bf16.mxu0 %v3426_v4 }
 0x252   : > { %2750 = vmatmul.mubr.msk.bf16.vlgmr.msra.gmra.mrb[4].mxu0 %vm1246_vm1, %v4005_v63 }
 0x253   : > { %2754 = vmatpush3.bf16.msra.mxu0 %v4000_v54  ;;  %2757 = vmatprep.mubr.msk.bf16.mxu0 %vm3428_vm0, %v3426_v4 }
 0x254   : > { %2755 = vmatprep.subr.bf16.mxu0 %v3426_v4 }
 0x257   : > { %2756 = vmatpush3.bf16.msra.mxu0 %v4009_v7 }
 0x258   : > { %2761 = vmatprep.subr.bf16.mxu0 %v3426_v4 }
 0x325   : > { %v1290_v10 = vpop.f32.mrb[4].mxu0 }
 0x326   : > { %v1291_v12 = vadd.f32 %v1290_v10, %v4022_v9  ;;  %v2751_v13 = vpop.f32.mrb[5].mxu0 }
 0x327   : > { %v1293_v14 = vpop.f32.mrb[6].mxu0 }
 0x328   : > { %v1294_v15 = vadd.f32 %v1293_v14, %v4024_v11  ;;  %v2752_v16 = vpop.f32.mrb[7].mxu0  ;;  %v1297_v17 = vsel %vm1246_vm1, %v1291_v12, -inf }
 0x329   : > { %1298 = vmax.xlane.f32.xlu0 %v1297_v17 }
 0x32a   : > { %v1300_v18 = vsel %vm1246_vm1, %v1294_v15, -inf }
 0x32d   : > { %1301 = vmax.xlane.f32.xlu0 %v1300_v18 }
 0x343   : > { %1369 = vrot.lane.b32.xlu0 %v3998_v52, %s3429_s14 }
 0x3b6   : > { %v1299_v19 = vpop.xlane.xlu0 %1298 }
 0x3b7   : > { %v1303_v20 = vsub.f32 %v1291_v12, %v1299_v19 }
 0x3b9   : > { %v1305_v21 = vmul.f32 1.442695, %v1303_v20 }
 0x3ba   : > { %v1302_v22 = vpop.xlane.xlu0 %1301 }
 0x3bb   : > { %3050 = vpow2.f32 %v1305_v21  ;;  %v1304_v23 = vsub.f32 %v1294_v15, %v1302_v22 }
 0x3bd   : > { %v1307_v24 = vmul.f32 1.442695, %v1304_v23 }
 0x3be   : > { %v1370_v37 = vpop.permute.xlu0 %1369 }
 0x3bf   : > { %3052 = vpow2.f32 %v1307_v24  ;;  %v1377_v39 = vsel %vm1246_vm1, %v1370_v37, 0 }
 0x3c5   : > { %v3051_v25 = vpop.eup %3050 }
 0x3c6   : > { %v1309_v26 = vsel %vm1246_vm1, %v3051_v25, 0.0 }
 0x3c7   : > { %1310 = vadd.xlane.f32.xlu1 %v1309_v26 }
 0x3c9   : > { %v3053_v27 = vpop.eup %3052 }
 0x3ca   : > { %v1312_v28 = vsel %vm1246_vm1, %v3053_v27, 0.0 }
 0x3cb   : > { %1313 = vadd.xlane.f32.xlu1 %v1312_v28 }
 0x3dc   : > { %1371 = vrot.lane.b32.xlu1 %v4007_v6, %s3429_s14 }
 0x3e0   : > { %1365 = vrot.lane.b32.xlu1 %v4005_v63, %s3429_s14 }
 0x454   : > { %v1311_v31 = vpop.xlane.xlu1 %1310 }
 0x455   : > { %3054 = vrcp.f32 %v1311_v31 }
 0x458   : > { %v1314_v32 = vpop.xlane.xlu1 %1313 }
 0x459   : > { %3056 = vrcp.f32 %v1314_v32 }
 0x45c   : > { %v1372_v40 = vpop.permute.xlu1 %1371 }
 0x45d   : > { %v1380_v41 = vsel %vm1246_vm1, %v1372_v40, 0 }
 0x45f   : > { %v3055_v33 = vpop.eup %3054 }
 0x460   : > { %v1317_v35 = vmul.f32 %v3055_v33, %v3051_v25  ;;  %v1366_v42 = vpop.permute.xlu1 %1365 }
 0x463   : > { %v3057_v34 = vpop.eup %3056 }
 0x464   : > { %v1318_v36 = vmul.f32 %v3057_v34, %v3053_v27 }
 0x466   : > { %v1319_v38 = vpack.c.bf16 %v1318_v36, %v1317_v35 }
 0x468   : > { %2758 = vmatmul.mubr.msk.bf16.vlgmr.msra.gmra.mrb[8].mxu0 %vm1246_vm1, %v1319_v38 }
 0x469   : > { %2762 = vmatpush3.bf16.xpose.msra.mxu0 %v1377_v39  ;;  %2765 = vmatprep.mubr.msk.bf16.mxu0 %vm3428_vm0, %v3426_v4 }
 0x46a   : > { %2763 = vmatprep.subr.bf16.mxu0 %v3426_v4 }
 0x471   : > { %2764 = vmatpush3.bf16.xpose.msra.mxu0 %v1380_v41 }
 0x472   : > { %2785 = vmatprep.subr.bf16.mxu0 %v3426_v4 }
 0x478   : > { %2766 = vmatmul.mubr.msk.bf16.vlgmr.msra.gmra.mrb[12].mxu0 %vm1246_vm1, %v1366_v42 }
 0x479   : > { %2789 = vmatprep.mubr.msk.bf16.mxu0 %vm3428_vm0, %v3426_v4 }
 0x53b   : > { %v4048_v43 = vpop.f32.mrb[8].mxu0 }
 0x53c   : > { %v2759_v44 = vpop.f32.mrb[9].mxu0 }
 0x53d   : > { %v4050_v45 = vpop.f32.mrb[10].mxu0 }
 0x53e   : > { %v2760_v46 = vpop.f32.mrb[11].mxu0 }
 0x54b   : > { %v1416_v47 = vpop.f32.mrb[12].mxu0 }
 0x54c   : > { %v1417_v48 = vadd.f32 %v1416_v47, %v4022_v9  ;;  %v2767_v49 = vpop.f32.mrb[13].mxu0 }
 0x54d   : > { %v1419_v50 = vpop.f32.mrb[14].mxu0 }
 0x54e   : > { %v1420_v51 = vadd.f32 %v1419_v50, %v4024_v11  ;;  %v2768_v53 = vpop.f32.mrb[15].mxu0  ;;  %v1423_v55 = vsel %vm1246_vm1, %v1417_v48, -inf }
 0x54f   : > { %1424 = vmax.xlane.f32.xlu1 %v1423_v55 }
 0x550   : > { %v1426_v56 = vsel %vm1246_vm1, %v1420_v51, -inf }
 0x551   : > { %1427 = vmax.xlane.f32.xlu0 %v1426_v56 }
 0x560   : > { %1448 = vrot.lane.b32.xlu1 %v4000_v54, %s3429_s14 }
 0x564   : > { %1500 = vrot.lane.b32.xlu1 %v3998_v52, %s3430_s16 }
 0x568   : > { %1502 = vrot.lane.b32.xlu1 %v4007_v6, %s3430_s16 }
 0x56c   : > { %1498 = vrot.lane.b32.xlu1 %v4005_v63, %s3430_s16 }
 0x5dc   : > { %v1425_v57 = vpop.xlane.xlu1 %1424 }
 0x5dd   : > { %v1429_v58 = vsub.f32 %v1417_v48, %v1425_v57 }
 0x5de   : > { %v1428_v59 = vpop.xlane.xlu0 %1427 }
 0x5df   : > { %v1431_v60 = vmul.f32 1.442695, %v1429_v58  ;;  %v1430_v61 = vsub.f32 %v1420_v51, %v1428_v59 }
 0x5e0   : > { %v1449_v62 = vpop.permute.xlu1 %1448 }
 0x5e1   : > { %3058 = vpow2.f32 %v1431_v60  ;;  %v1433_v0 = vmul.f32 1.442695, %v1430_v61  ;;  %2770 = vmatpush3.bf16.msra.mxu1 %v1449_v62 }
 0x5e2   : > { %2771 = vmatprep.subr.bf16.mxu1 %v3426_v4 }
 0x5e3   : > { %3060 = vpow2.f32 %v1433_v0 }
 0x5e4   : > { %v1501_v17 = vpop.permute.xlu1 %1500 }
 0x5e5   : > { %v1508_v19 = vsel %vm1246_vm1, %v1501_v17, 0 }
 0x5e8   : > { %v1503_v20 = vpop.permute.xlu1 %1502 }
 0x5e9   : > { %v1511_v21 = vsel %vm1246_vm1, %v1503_v20, 0 }
 0x5eb   : > { %v3059_v1 = vpop.eup %3058 }
 0x5ec   : > { %v1435_v2 = vsel %vm1246_vm1, %v3059_v1, 0.0  ;;  %v1499_v22 = vpop.permute.xlu1 %1498 }
 0x5ed   : > { %v3061_v3 = vpop.eup %3060  ;;  %1436 = vadd.xlane.f32.xlu0 %v1435_v2 }
 0x5ee   : > { %v1438_v5 = vsel %vm1246_vm1, %v3061_v3, 0.0 }
 0x5f1   : > { %1439 = vadd.xlane.f32.xlu0 %v1438_v5 }
 0x607   : > { %1450 = vrot.lane.b32.xlu0 %v4009_v7, %s3429_s14 }
 0x67a   : > { %v1437_v8 = vpop.xlane.xlu0 %1436 }
 0x67b   : > { %3062 = vrcp.f32 %v1437_v8 }
 0x67e   : > { %v1440_v10 = vpop.xlane.xlu0 %1439 }
 0x67f   : > { %3064 = vrcp.f32 %v1440_v10 }
 0x682   : > { %v1451_v12 = vpop.permute.xlu0 %1450 }
 0x683   : > { %2772 = vmatpush3.bf16.msra.mxu1 %v1451_v12 }
 0x684   : > { %2777 = vmatprep.subr.bf16.mxu1 %v3426_v4 }
 0x685   : > { %v3063_v13 = vpop.eup %3062 }
 0x686   : > { %v1443_v15 = vmul.f32 %v3063_v13, %v3059_v1 }
 0x689   : > { %v3065_v14 = vpop.eup %3064 }
 0x68a   : > { %v1444_v16 = vmul.f32 %v3065_v14, %v3061_v3 }
 0x68c   : > { %v1445_v18 = vpack.c.bf16 %v1444_v16, %v1443_v15 }
 0x68e   : > { %2774 = vmatmul.mubr.msk.bf16.vlgmr.msra.gmra.mrb[8].mxu1 %vm1246_vm1, %v1445_v18 }
 0x68f   : > { %2778 = vmatpush3.bf16.xpose.msra.mxu1 %v1508_v19  ;;  %2781 = vmatprep.mubr.msk.bf16.mxu1 %vm3428_vm0, %v3426_v4 }
 0x690   : > { %2779 = vmatprep.subr.bf16.mxu1 %v3426_v4 }
 0x697   : > { %2780 = vmatpush3.bf16.xpose.msra.mxu1 %v1511_v21 }
 0x698   : > { %2801 = vmatprep.subr.bf16.mxu1 %v3426_v4 }
 0x69e   : > { %2782 = vmatmul.mubr.msk.bf16.vlgmr.msra.gmra.mrb[12].mxu1 %vm1246_vm1, %v1499_v22 }
 0x69f   : > { %2805 = vmatprep.mubr.msk.bf16.mxu1 %vm3428_vm0, %v3426_v4 }
 0x761   : > { %v4080_v23 = vpop.f32.mrb[8].mxu1 }
 0x762   : > { %v2775_v24 = vpop.f32.mrb[9].mxu1 }
 0x763   : > { %v4082_v25 = vpop.f32.mrb[10].mxu1 }
 0x764   : > { %v2977_v26 = vpack.i.bf16 %v4082_v25, %v4080_v23  ;;  %v2776_v27 = vpop.f32.mrb[11].mxu1 }
 0x771   : > { %v1547_v28 = vpop.f32.mrb[12].mxu1 }
 0x772   : > { %v1548_v31 = vadd.f32 %v1547_v28, %v4022_v9  ;;  %v2783_v32 = vpop.f32.mrb[13].mxu1 }
 0x773   : > { %v1550_v33 = vpop.f32.mrb[14].mxu1 }
 0x774   : > { %v1551_v34 = vadd.f32 %v1550_v33, %v4024_v11  ;;  %v2784_v35 = vpop.f32.mrb[15].mxu1  ;;  %v1554_v36 = vsel %vm1246_vm1, %v1548_v31, -inf }
 0x775   : > { %1555 = vmax.xlane.f32.xlu0 %v1554_v36  ;;  %v3027_v36 = vld [vmem:[%s3888_s12 + $0x8] sm:$0xff]  }
 0x776   : > { %v1557_v37 = vsel %vm1246_vm1, %v1551_v34, -inf }
 0x777   : > { %1558 = vmax.xlane.f32.xlu1 %v1557_v37  ;;  %v3028_v37 = vld [vmem:[%s3888_s12 + $0x10] sm:$0xff]  }
 0x788   : > { %1579 = vrot.lane.b32.xlu1 %v4009_v7, %s3430_s16 }
 0x78c   : > { %1629 = vrot.lane.b32.xlu1 %v3998_v52, %s3431_s23 }
 0x790   : > { %1631 = vrot.lane.b32.xlu1 %v4007_v6, %s3431_s23 }
 0x802   : > { %v1556_v38 = vpop.xlane.xlu0 %1555 }
 0x803   : > { %v1560_v39 = vsub.f32 %v1548_v31, %v1556_v38  ;;  %v3029_v38 = vld [vmem:[%s3888_s12 + $0x18] sm:$0xff]  }
 0x804   : > { %v1559_v40 = vpop.xlane.xlu1 %1558 }
 0x805   : > { %v1562_v41 = vmul.f32 1.442695, %v1560_v39  ;;  %v1561_v42 = vsub.f32 %v1551_v34, %v1559_v40  ;;  %v3030_v39 = vld [vmem:[%s3888_s12 + $0x20] sm:$0xff]   ;;  %v3031_v40 = vld [vmem:[%s3888_s12 + $0x28] sm:$0xff]  }
 0x807   : > { %3066 = vpow2.f32 %v1562_v41  ;;  %v1564_v44 = vmul.f32 1.442695, %v1561_v42  ;;  %v3032_v41 = vld [vmem:[%s3888_s12 + $0x30] sm:$0xff]   ;;  %v3033_v42 = vld [vmem:[%s3888_s12 + $0x38] sm:$0xff]  }
 0x808   : > { %v1580_v51 = vpop.permute.xlu1 %1579 }
 0x809   : > { %3068 = vpow2.f32 %v1564_v44 }
 0x80c   : > { %v1630_v58 = vpop.permute.xlu1 %1629 }
 0x810   : > { %v1632_v60 = vpop.permute.xlu1 %1631 }
 0x811   : > { %v3067_v46 = vpop.eup %3066  ;;  %v1640_v61 = vsel %vm1246_vm1, %v1632_v60, 0 }
 0x812   : > { %v1566_v47 = vsel %vm1246_vm1, %v3067_v46, 0.0 }
 0x813   : > { %v3069_v48 = vpop.eup %3068  ;;  %1567 = vadd.xlane.f32.xlu0 %v1566_v47 }
 0x814   : > { %v1569_v49 = vsel %vm1246_vm1, %v3069_v48, 0.0 }
 0x817   : > { %1570 = vadd.xlane.f32.xlu0 %v1569_v49 }
 0x82d   : > { %1577 = vrot.lane.b32.xlu0 %v4000_v54, %s3430_s16 }
 0x831   : > { %1627 = vrot.lane.b32.xlu0 %v4005_v63, %s3431_s23  ;;  %v1637_v63 = vsel %vm1246_vm1, %v1630_v58, 0 }
 0x8a0   : > { %v1568_v52 = vpop.xlane.xlu0 %1567 }
 0x8a1   : > { %3070 = vrcp.f32 %v1568_v52 }
 0x8a4   : > { %v1571_v6 = vpop.xlane.xlu0 %1570 }
 0x8a5   : > { %3072 = vrcp.f32 %v1571_v6 }
 0x8a8   : > { %v1578_v50 = vpop.permute.xlu0 %1577 }
 0x8a9   : > { %2786 = vmatpush3.bf16.msra.mxu0 %v1578_v50 }
 0x8aa   : > { %2787 = vmatprep.subr.bf16.mxu0 %v3426_v4 }
 0x8ab   : > { %v3071_v53 = vpop.eup %3070 }
 0x8ac   : > { %v1574_v56 = vmul.f32 %v3071_v53, %v3067_v46  ;;  %v1628_v62 = vpop.permute.xlu0 %1627 }
 0x8ad   : > { %2788 = vmatpush3.bf16.msra.mxu0 %v1580_v51 }
 0x8ae   : > { %2793 = vmatprep.subr.bf16.mxu0 %v3426_v4 }
 0x8af   : > { %v3073_v55 = vpop.eup %3072 }
 0x8b0   : > { %v1575_v57 = vmul.f32 %v3073_v55, %v3069_v48 }
 0x8b2   : > { %v1576_v59 = vpack.c.bf16 %v1575_v57, %v1574_v56 }
 0x8b4   : > { %2790 = vmatmul.mubr.msk.bf16.vlgmr.msra.gmra.mrb[16].mxu0 %vm1246_vm1, %v1576_v59 }
 0x8b5   : > { %2797 = vmatprep.mubr.msk.bf16.mxu0 %vm3428_vm0, %v3426_v4 }
 0x8b6   : > { %2794 = vmatpush3.bf16.xpose.msra.mxu0 %v1637_v63 }
 0x8b7   : > { %2795 = vmatprep.subr.bf16.mxu0 %v3426_v4 }
 0x8be   : > { %2796 = vmatpush3.bf16.xpose.msra.mxu0 %v1640_v61 }
 0x8bf   : > { %2829 = vmatprep.subr.bf16.mxu0 %v3426_v4 }
 0x8c5   : > { %2798 = vmatmul.mubr.msk.bf16.vlgmr.msra.gmra.mrb[20].mxu0 %vm1246_vm1, %v1628_v62 }
 0x8c6   : > { %2845 = vmatprep.mubr.msk.bf16.mxu0 %vm3428_vm0, %v3426_v4 }
 0x987   : > { %v1620_v0 = vpop.f32.mrb[16].mxu0 }
 0x988   : > { %v2791_v1 = vpop.f32.mrb[17].mxu0 }
 0x989   : > { %v1623_v2 = vpop.f32.mrb[18].mxu0 }
 0x98a   : > { %v2982_v3 = vpack.i.bf16 %v1623_v2, %v1620_v0  ;;  %v2792_v5 = vpop.f32.mrb[19].mxu0  ;;  %v2613_v2 = vld [vmem:[%s4412_s11] ss:$0 sm:$0xff] }
 0x998   : > { %v1676_v8 = vpop.f32.mrb[20].mxu0 }
 0x999   : > { %v1677_v10 = vadd.f32 %v1676_v8, %v4022_v9  ;;  %v2799_v12 = vpop.f32.mrb[21].mxu0 }
 0x99a   : > { %v1679_v13 = vpop.f32.mrb[22].mxu0 }
 0x99b   : > { %v1680_v14 = vadd.f32 %v1679_v13, %v4024_v11  ;;  %v2800_v15 = vpop.f32.mrb[23].mxu0  ;;  %v1683_v16 = vsel %vm1246_vm1, %v1677_v10, -inf }
 0x99c   : > { %1684 = vmax.xlane.f32.xlu1 %v1683_v16 }
 0x99d   : > { %v1686_v17 = vsel %vm1246_vm1, %v1680_v14, -inf }
 0x99e   : > { %1687 = vmax.xlane.f32.xlu0 %v1686_v17 }
 0x9ad   : > { %1706 = vrot.lane.b32.xlu1 %v4000_v54, %s3431_s23 }
 0x9b1   : > { %2978 = vrot.lane.b32.xlu1 %v2977_v26, %s3431_s23 }
 0x9b5   : > { %2983 = vrot.lane.b32.xlu1 %v2982_v3, %s3430_s16 }
 0xa29   : > { %v1685_v9 = vpop.xlane.xlu1 %1684 }
 0xa2a   : > { %v1689_v18 = vsub.f32 %v1677_v10, %v1685_v9 }
 0xa2b   : > { %v1688_v11 = vpop.xlane.xlu0 %1687 }
 0xa2c   : > { %v1691_v19 = vmul.f32 1.442695, %v1689_v18  ;;  %v1690_v20 = vsub.f32 %v1680_v14, %v1688_v11 }
 0xa2d   : > { %v1707_v21 = vpop.permute.xlu1 %1706 }
 0xa2e   : > { %3074 = vpow2.f32 %v1691_v19  ;;  %v1693_v22 = vmul.f32 1.442695, %v1690_v20  ;;  %2802 = vmatpush3.bf16.msra.mxu1 %v1707_v21 }
 0xa2f   : > { %2803 = vmatprep.subr.bf16.mxu1 %v3426_v4 }
 0xa30   : > { %3076 = vpow2.f32 %v1693_v22 }
 0xa31   : > { %v2979_v52 = vpop.permute.xlu1 %2978 }
 0xa32   : > { %v2981_v50 = vunpack.i.h.bf16 %v2979_v52  ;;  %v2980_v51 = vunpack.i.l.bf16 %v2979_v52  ;;  %v3040_v52 = vld [vmem:[%s3894_s9 + $0x30] sm:$0xff]  }
 0xa34   : > { %v1781_v57 = vsel %vm1246_vm1, %v4050_v45, %v2981_v50  ;;  %v1780_v58 = vsel %vm1246_vm1, %v4048_v43, %v2980_v51 }
 0xa35   : > { %v2984_v6 = vpop.permute.xlu1 %2983 }
 0xa36   : > { %v2986_v53 = vunpack.i.h.bf16 %v2984_v6  ;;  %v2985_v55 = vunpack.i.l.bf16 %v2984_v6  ;;  %v3041_v6 = vld [vmem:[%s3894_s9 + $0x38] sm:$0xff]  }
 0xa38   : > { %v3075_v54 = vpop.eup %3074  ;;  %v1783_v60 = vsel %vm1782_vm2, %v1780_v58, %v2985_v55  ;;  %v1784_v61 = vsel %vm1782_vm2, %v1781_v57, %v2986_v53 }
 0xa39   : > { %v1695_v24 = vsel %vm1246_vm1, %v3075_v54, 0.0 }
 0xa3a   : > { %v3077_v27 = vpop.eup %3076  ;;  %1696 = vadd.xlane.f32.xlu0 %v1695_v24 }
 0xa3b   : > { %v1698_v23 = vsel %vm1246_vm1, %v3077_v27, 0.0 }
 0xa3e   : > { %1699 = vadd.xlane.f32.xlu0 %v1698_v23 }
 0xa54   : > { %1708 = vrot.lane.b32.xlu0 %v4009_v7, %s3431_s23  ;;  %v3026_v7 = vld [vmem:[%s3888_s12] sm:$0xff]   ;;  %s4421_s23 = sld [smem:[#allocation50_spill]] (!%p2644_p2) }
 0xac7   : > { %v1697_v25 = vpop.xlane.xlu0 %1696 }
 0xac8   : > { %3078 = vrcp.f32 %v1697_v25  ;;  %v2623_v25 = vld [vmem:[%s923_s26] ss:$0 sm:$0xff] }
 0xacb   : > { %v1700_v26 = vpop.xlane.xlu0 %1699 }
 0xacc   : > { %3080 = vrcp.f32 %v1700_v26 }
 0xacf   : > { %v1709_v28 = vpop.permute.xlu0 %1708 }
 0xad0   : > { %2804 = vmatpush3.bf16.msra.mxu1 %v1709_v28 }
 0xad1   : > { %2809 = vmatprep.subr.bf16.mxu1 %v3426_v4 }
 0xad2   : > { %v3079_v31 = vpop.eup %3078 }
 0xad3   : > { %v1703_v33 = vmul.f32 %v3079_v31, %v3075_v54 }
 0xad6   : > { %v3081_v32 = vpop.eup %3080 }
 0xad7   : > { %v1704_v34 = vmul.f32 %v3081_v32, %v3077_v27  ;;  %v2622_v27 = vld [vmem:[%s920_s10] ss:$0 sm:$0xff] }
 0xad9   : > { %v1705_v35 = vpack.c.bf16 %v1704_v34, %v1703_v33 }
 0xadb   : > { %2806 = vmatmul.mubr.msk.bf16.vlgmr.msra.gmra.mrb[16].mxu1 %vm1246_vm1, %v1705_v35  ;;  %v3034_v35 = vld [vmem:[%s3894_s9] sm:$0xff]  }
 0xadc   : > { %2825 = vmatprep.mubr.msk.bf16.mxu1 %vm3428_vm0, %v3426_v4  ;;  %2810 = vmatpush3.bf16.msra.mxu1 %v3026_v7 }
 0xadd   : > { %2811 = vmatprep.subr.bf16.mxu1 %v3426_v4  ;;  %2830 = vmatpush3.bf16.msra.mxu0 %v3034_v35 }
 0xade   : > { %2831 = vmatprep.subr.bf16.mxu0 %v3426_v4 }
 0xae0   : > { %2812 = vmatpush3.bf16.msra.mxu1 %v3027_v36 }
 0xae1   : > { %2813 = vmatprep.subr.bf16.mxu1 %v3426_v4 }
 0xae4   : > { %2814 = vmatpush3.bf16.msra.mxu1 %v3028_v37 }
 0xae5   : > { %2815 = vmatprep.subr.bf16.mxu1 %v3426_v4 }
 0xae8   : > { %2816 = vmatpush3.bf16.msra.mxu1 %v3029_v38 }
 0xae9   : > { %2817 = vmatprep.subr.bf16.mxu1 %v3426_v4 }
 0xaec   : > { %2818 = vmatpush3.bf16.msra.mxu1 %v3030_v39 }
 0xaed   : > { %2819 = vmatprep.subr.bf16.mxu1 %v3426_v4 }
 0xaf0   : > { %2820 = vmatpush3.bf16.msra.mxu1 %v3031_v40 }
 0xaf1   : > { %2821 = vmatprep.subr.bf16.mxu1 %v3426_v4 }
 0xaf4   : > { %2822 = vmatpush3.bf16.msra.mxu1 %v3032_v41 }
 0xaf5   : > { %2823 = vmatprep.subr.bf16.mxu1 %v3426_v4 }
 0xaf8   : > { %2824 = vmatpush3.bf16.msra.mxu1 %v3033_v42 }
 0xaf9   : > { %2849 = vmatprep.subr.bf16.mxu1 %v3426_v4 }
 0xbae   : > { %v1749_v44 = vpop.f32.mrb[16].mxu1 }
 0xbaf   : > { %v2807_v46 = vpop.f32.mrb[17].mxu1 }
 0xbb0   : > { %v1752_v47 = vpop.f32.mrb[18].mxu1  ;;  %v3036_v46 = vld [vmem:[%s3894_s9 + $0x10] sm:$0xff]  }
 0xbb1   : > { %v2987_v48 = vpack.i.bf16 %v1752_v47, %v1749_v44  ;;  %v2808_v49 = vpop.f32.mrb[19].mxu1  ;;  %v3035_v44 = vld [vmem:[%s3894_s9 + $0x8] sm:$0xff]   ;;  %v3037_v47 = vld [vmem:[%s3894_s9 + $0x18] sm:$0xff]  }
 0xbb2   : > { %2832 = vmatpush3.bf16.msra.mxu0 %v3035_v44  ;;  %v3039_v49 = vld [vmem:[%s3894_s9 + $0x28] sm:$0xff]  }
 0xbb3   : > { %2988 = vrot.lane.b32.xlu1 %v2987_v48, %s3429_s14  ;;  %2833 = vmatprep.subr.bf16.mxu0 %v3426_v4  ;;  %v3038_v48 = vld [vmem:[%s3894_s9 + $0x20] sm:$0xff]  }
 0xbb6   : > { %2834 = vmatpush3.bf16.msra.mxu0 %v3036_v46 }
 0xbb7   : > { %2835 = vmatprep.subr.bf16.mxu0 %v3426_v4 }
 0xbba   : > { %2836 = vmatpush3.bf16.msra.mxu0 %v3037_v47 }
 0xbbb   : > { %2837 = vmatprep.subr.bf16.mxu0 %v3426_v4 }
 0xbbe   : > { %2838 = vmatpush3.bf16.msra.mxu0 %v3038_v48 }
 0xbbf   : > { %2839 = vmatprep.subr.bf16.mxu0 %v3426_v4 }
 0xbc2   : > { %2840 = vmatpush3.bf16.msra.mxu0 %v3039_v49 }
 0xbc3   : > { %2841 = vmatprep.subr.bf16.mxu0 %v3426_v4 }
 0xbc6   : > { %2842 = vmatpush3.bf16.msra.mxu0 %v3040_v52 }
 0xbc7   : > { %2843 = vmatprep.subr.bf16.mxu0 %v3426_v4 }
 0xbca   : > { %2844 = vmatpush3.bf16.msra.mxu0 %v3041_v6 }
 0xc25   : > { %v2989_v56 = vpop.permute.xlu1 %2988 }
 0xc26   : > { %v2991_v59 = vunpack.i.h.bf16 %v2989_v56  ;;  %v2990_v63 = vunpack.i.l.bf16 %v2989_v56 }
 0xc28   : > { %v1787_v62 = vsel %vm1785_vm3, %v1784_v61, %v2991_v59  ;;  %v1786_v0 = vsel %vm1785_vm3, %v1783_v60, %v2990_v63  ;;  %v2624_v63 = vld [vmem:[%s926_s5] ss:$0 sm:$0xff] }
 0xc29   : > { %v1788_v1 = vpack.c.bf16 %v1787_v62, %v1786_v0  ;;  %v2625_v0 = vld [vmem:[%s929_s22] ss:$0 sm:$0xff] }
 0xc2b   : > { %2826 = vmatmul.mubr.bf16.vlgmr.msra.gmra.mrb[20].mxu1 %v1788_v1 }
 0xc2c   : > { %2865 = vmatprep.mubr.msk.bf16.mxu1 %vm3428_vm0, %v3426_v4 }
 0xcfe   : > { %v1894_v45 = vpop.f32.mrb[20].mxu1 }
 0xcff   : > { %v1895_v3 = vadd.f32 %v2613_v2, %v1894_v45  ;;  %v2827_v5 = vpop.f32.mrb[21].mxu1 }
 0xd00   : > { %v1897_v43 = vpop.f32.mrb[22].mxu1  ;;  %v3042_v5 = vld [vmem:[%s3896_s21] sm:$0xff]  }
 0xd01   : > { %v1898_v8 = vadd.f32 %v2613_v2, %v1897_v43  ;;  %v2828_v10 = vpop.f32.mrb[23].mxu1  ;;  %v1901_v12 = vadd.f32 %v1895_v3, %v3979_v29  ;;  %2850 = vmatpush3.bf16.msra.mxu1 %v3042_v5  ;;  %v3043_v43 = vld [vmem:[%s3896_s21 + $0x8] sm:$0xff]  }
 0xd02   : > { %2851 = vmatprep.subr.bf16.mxu1 %v3426_v4  ;;  %v3045_v10 = vld [vmem:[%s3896_s21 + $0x18] sm:$0xff]  }
 0xd03   : > { %1905 = vadd.xlane.f32.xlu0 %v1901_v12  ;;  %v1902_v13 = vadd.f32 %v1898_v8, %v3981_v30  ;;  %v3044_v8 = vld [vmem:[%s3896_s21 + $0x10] sm:$0xff]  }
 0xd05   : > { %1907 = vadd.xlane.f32.xlu1 %v1902_v13  ;;  %2852 = vmatpush3.bf16.msra.mxu1 %v3043_v43 }
 0xd06   : > { %2853 = vmatprep.subr.bf16.mxu1 %v3426_v4 }
 0xd09   : > { %2854 = vmatpush3.bf16.msra.mxu1 %v3044_v8 }
 0xd0a   : > { %2855 = vmatprep.subr.bf16.mxu1 %v3426_v4 }
 0xd0d   : > { %2856 = vmatpush3.bf16.msra.mxu1 %v3045_v10 }
 0xd0e   : > { %2857 = vmatprep.subr.bf16.mxu1 %v3426_v4 }
 0xd90   : > { %v1906_v14 = vpop.xlane.xlu0 %1905 }
 0xd91   : > { %v1910_v15 = vmul.f32 0.0078125, %v1906_v14  ;;  %v3048_v14 = vld [vmem:[%s3896_s21 + $0x30] sm:$0xff]  }
 0xd92   : > { %v1908_v16 = vpop.xlane.xlu1 %1907 }
 0xd93   : > { %v1912_v17 = vsub.f32 %v1901_v12, %v1910_v15  ;;  %v1911_v9 = vmul.f32 0.0078125, %v1908_v16  ;;  %v3046_v12 = vld [vmem:[%s3896_s21 + $0x20] sm:$0xff]   ;;  %v3049_v15 = vld [vmem:[%s3896_s21 + $0x38] sm:$0xff]  }
 0xd94   : > { %2858 = vmatpush3.bf16.msra.mxu1 %v3046_v12  ;;  %v2626_v16 = vld [vmem:[%s932_s2] ss:$0 sm:$0xff] }
 0xd95   : > { %v1913_v18 = vsub.f32 %v1902_v13, %v1911_v9  ;;  %v1914_v11 = vmul.f32 %v1912_v17, %v1912_v17  ;;  %2859 = vmatprep.subr.bf16.mxu1 %v3426_v4  ;;  %v3047_v13 = vld [vmem:[%s3896_s21 + $0x28] sm:$0xff]  }
 0xd97   : > { %1916 = vadd.xlane.f32.xlu0 %v1914_v11  ;;  %v1915_v19 = vmul.f32 %v1913_v18, %v1913_v18 }
 0xd98   : > { %2860 = vmatpush3.bf16.msra.mxu1 %v3047_v13 }
 0xd99   : > { %2861 = vmatprep.subr.bf16.mxu1 %v3426_v4 }
 0xd9b   : > { %1918 = vadd.xlane.f32.xlu0 %v1915_v19 }
 0xd9c   : > { %2862 = vmatpush3.bf16.msra.mxu1 %v3048_v14 }
 0xd9d   : > { %2863 = vmatprep.subr.bf16.mxu1 %v3426_v4 }
 0xda0   : > { %2864 = vmatpush3.bf16.msra.mxu1 %v3049_v15 }
 0xe24   : > { %v1917_v20 = vpop.xlane.xlu0 %1916 }
 0xe25   : > { %v1920_v21 = vmul.f32 0.0078125, %v1917_v20 }
 0xe27   : > { %v1922_v22 = vadd.f32 1e-05, %v1920_v21 }
 0xe28   : > { %v1919_v29 = vpop.xlane.xlu0 %1918 }
 0xe29   : > { %3082 = vrsqrt.f32 %v1922_v22  ;;  %v1921_v30 = vmul.f32 0.0078125, %v1919_v29 }
 0xe2b   : > { %v1923_v54 = vadd.f32 1e-05, %v1921_v30 }
 0xe2d   : > { %3084 = vrsqrt.f32 %v1923_v54 }
 0xe33   : > { %v3083_v24 = vpop.eup %3082 }
 0xe34   : > { %v1926_v23 = vmul.f32 %v3083_v24, %v1912_v17 }
 0xe36   : > { %v1934_v26 = vmul.f32 %v2622_v27, %v1926_v23 }
 0xe37   : > { %v3085_v28 = vpop.eup %3084 }
 0xe38   : > { %v4174_v31 = vadd.f32 %v2623_v25, %v1934_v26  ;;  %v1927_v32 = vmul.f32 %v3085_v28, %v1913_v18 }
 0xe3a   : > { %1946 = vadd.xlane.f32.xlu0 %v4174_v31  ;;  %v1935_v33 = vmul.f32 %v2622_v27, %v1927_v32 }
 0xe3c   : > { %v4177_v34 = vadd.f32 %v2623_v25, %v1935_v33 }
 0xe3e   : > { %1948 = vadd.xlane.f32.xlu1 %v4177_v34 }
 0xec7   : > { %v1947_v7 = vpop.xlane.xlu0 %1946 }
 0xec8   : > { %v1950_v36 = vmul.f32 0.0078125, %v1947_v7 }
 0xeca   : > { %v1952_v37 = vsub.f32 %v4174_v31, %v1950_v36 }
 0xecb   : > { %v1949_v38 = vpop.xlane.xlu1 %1948 }
 0xecc   : > { %v1951_v39 = vmul.f32 0.0078125, %v1949_v38  ;;  %v1954_v40 = vmul.f32 %v1952_v37, %v1952_v37 }
 0xece   : > { %v1953_v41 = vsub.f32 %v4177_v34, %v1951_v39  ;;  %1956 = vadd.xlane.f32.xlu0 %v1954_v40  ;;  %v2635_v39 = vld [vmem:[%s935_s18] ss:$0 sm:$0xff] }
 0xed0   : > { %v1955_v42 = vmul.f32 %v1953_v41, %v1953_v41 }
 0xed2   : > { %1958 = vadd.xlane.f32.xlu1 %v1955_v42 }
 0xf5b   : > { %v1957_v50 = vpop.xlane.xlu0 %1956 }
 0xf5c   : > { %v1960_v51 = vmul.f32 0.0078125, %v1957_v50 }
 0xf5e   : > { %v1962_v53 = vadd.f32 1e-05, %v1960_v51 }
 0xf5f   : > { %v1959_v55 = vpop.xlane.xlu1 %1958 }
 0xf60   : > { %3086 = vrsqrt.f32 %v1962_v53  ;;  %v1961_v56 = vmul.f32 0.0078125, %v1959_v55 }
 0xf62   : > { %v1963_v57 = vadd.f32 1e-05, %v1961_v56 }
 0xf64   : > { %3088 = vrsqrt.f32 %v1963_v57 }
 0xf6a   : > { %v3087_v58 = vpop.eup %3086 }
 0xf6b   : > { %v1966_v59 = vmul.f32 %v3087_v58, %v1952_v37 }
 0xf6d   : > { %v1974_v62 = vmul.f32 %v2624_v63, %v1966_v59 }
 0xf6e   : > { %v3089_v60 = vpop.eup %3088 }
 0xf6f   : > { %v1967_v61 = vmul.f32 %v3089_v60, %v1953_v41  ;;  %v1982_v2 = vadd.f32 %v2625_v0, %v1974_v62 }
 0xf71   : > { %v1975_v1 = vmul.f32 %v2624_v63, %v1967_v61 }
 0xf73   : > { %v1983_v45 = vadd.f32 %v2625_v0, %v1975_v1  ;;  %v2645_v0 = vld [vmem:[%s4420_s19] ss:$0 sm:$0xff] (!%p2644_p2) }
 0xf75   : > { %v1984_v3 = vpack.c.bf16 %v1983_v45, %v1982_v2 }
 0xf77   : > { %2846 = vmatmul.mubr.bf16.vlgmr.msra.gmra.mrb[24].mxu0 %v1984_v3  ;;  %v2646_v3 = vld [vmem:[%s4421_s23] ss:$0 sm:$0xff] (!%p2644_p2) }
0x104a   : > { %v2090_v17 = vpop.f32.mrb[24].mxu0 }
0x104b   : > { %v2091_v9 = vadd.f32 %v2626_v16, %v2090_v17  ;;  %v2847_v18 = vpop.f32.mrb[25].mxu0 }
0x104c   : > { %v2093_v11 = vpop.f32.mrb[26].mxu0 }
0x104d   : > { %v2097_v19 = vmul.f32 %v2091_v9, %v2091_v9  ;;  %v2094_v20 = vadd.f32 %v2626_v16, %v2093_v11  ;;  %v2848_v21 = vpop.f32.mrb[27].mxu0 }
0x104f   : > { %v2099_v22 = vmul.f32 %v2097_v19, %v2091_v9  ;;  %v2098_v29 = vmul.f32 %v2094_v20, %v2094_v20 }
0x1051   : > { %v2101_v30 = vmul.f32 0.044715, %v2099_v22  ;;  %v2100_v54 = vmul.f32 %v2098_v29, %v2094_v20 }
0x1053   : > { %v2103_v24 = vadd.f32 %v2101_v30, %v2091_v9  ;;  %v2102_v4 = vmul.f32 0.044715, %v2100_v54 }
0x1055   : > { %v2105_v27 = vmul.f32 0.7978846, %v2103_v24  ;;  %v2104_v23 = vadd.f32 %v2102_v4, %v2094_v20 }
0x1057   : > { %3090 = vtanh.f32 %v2105_v27  ;;  %v2106_v25 = vmul.f32 0.7978846, %v2104_v23 }
0x1059   : > { %3092 = vtanh.f32 %v2106_v25 }
0x1061   : > { %v3091_v26 = vpop.eup %3090 }
0x1062   : > { %v2109_v28 = vadd.f32 1.0, %v3091_v26 }
0x1063   : > { %v3093_v32 = vpop.eup %3092 }
0x1064   : > { %v2111_v33 = vmul.f32 0.5, %v2109_v28  ;;  %v2110_v35 = vadd.f32 1.0, %v3093_v32 }
0x1066   : > { %v2112_v7 = vmul.f32 0.5, %v2110_v35  ;;  %v2113_v36 = vmul.f32 %v2111_v33, %v2091_v9 }
0x1068   : > { %v2114_v37 = vmul.f32 %v2112_v7, %v2094_v20 }
0x106a   : > { %v2115_v38 = vpack.c.bf16 %v2114_v37, %v2113_v36 }
0x106c   : > { %2866 = vmatmul.mubr.bf16.vlgmr.msra.gmra.mrb[24].mxu1 %v2115_v38 }
0x113f   : > { %v2221_v40 = vpop.f32.mrb[24].mxu1 }
0x1140   : > { %v2222_v41 = vadd.f32 %v2635_v39, %v2221_v40  ;;  %v2867_v42 = vpop.f32.mrb[25].mxu1  ;;  %2235 = sbr.rel (%p2644_p2) target bundleno = 4738 (0x1282), region = 136 }
0x1141   : > { %v2224_v44 = vpop.f32.mrb[26].mxu1 }
0x1142   : > { %v2228_v46 = vadd.f32 %v2222_v41, %v4174_v31  ;;  %v2225_v47 = vadd.f32 %v2635_v39, %v2224_v44  ;;  %v2868_v48 = vpop.f32.mrb[27].mxu1 }
0x1144   : > { %2230 = vst [vmem:[#allocation2] sm:$0xff] %v2228_v46  ;;  %v2229_v49 = vadd.f32 %v2225_v47, %v4177_v34  ;;  %2238 = vadd.xlane.f32.xlu0 (!%p2644_p2), %v2228_v46 }
0x1146   : > { %2231 = vst [vmem:[#allocation2 + $0x8] sm:$0xff] %v2229_v49 }
0x1148   : > { %2240 = vadd.xlane.f32.xlu0 %v2229_v49 }
0x11d1   : > { %v2239_v52 = vpop.xlane.xlu0 %2238 }
0x11d2   : > { %v2242_v6 = vmul.f32 0.0078125, %v2239_v52 }
0x11d4   : > { %v2244_v50 = vsub.f32 %v2228_v46, %v2242_v6 }
0x11d5   : > { %v2241_v51 = vpop.xlane.xlu0 %2240 }
0x11d6   : > { %v2243_v53 = vmul.f32 0.0078125, %v2241_v51  ;;  %v2246_v55 = vmul.f32 %v2244_v50, %v2244_v50 }
0x11d8   : > { %v2245_v56 = vsub.f32 %v2229_v49, %v2243_v53  ;;  %2248 = vadd.xlane.f32.xlu1 %v2246_v55 }
0x11da   : > { %v2247_v31 = vmul.f32 %v2245_v56, %v2245_v56 }
0x11dc   : > { %2250 = vadd.xlane.f32.xlu1 %v2247_v31 }
0x1265   : > { %v2249_v57 = vpop.xlane.xlu1 %2248 }
0x1266   : > { %v2252_v58 = vmul.f32 0.0078125, %v2249_v57 }
0x1268   : > { %v2254_v59 = vadd.f32 1e-05, %v2252_v58 }
0x1269   : > { %v2251_v34 = vpop.xlane.xlu1 %2250 }
0x126a   : > { %3094 = vrsqrt.f32 %v2254_v59  ;;  %v2253_v63 = vmul.f32 0.0078125, %v2251_v34 }
0x126c   : > { %v2255_v60 = vadd.f32 1e-05, %v2253_v63 }
0x126e   : > { %3096 = vrsqrt.f32 %v2255_v60 }
0x1274   : > { %v3095_v61 = vpop.eup %3094 }
0x1275   : > { %v2258_v62 = vmul.f32 %v3095_v61, %v2244_v50 }
0x1277   : > { %v2266_v2 = vmul.f32 %v2645_v0, %v2258_v62 }
0x1278   : > { %v3097_v1 = vpop.eup %3096 }
0x1279   : > { %v2259_v45 = vmul.f32 %v3097_v1, %v2245_v56  ;;  %v2274_v43 = vadd.f32 %v2646_v3, %v2266_v2 }
0x127b   : > { %v2267_v5 = vmul.f32 %v2645_v0, %v2259_v45 }
0x127d   : > { %v2275_v8 = vadd.f32 %v2646_v3, %v2267_v5 }
0x127f   : > { %v2663_v10 = vpack.c.bf16 %v2275_v8, %v2274_v43 }
0x1281   : > { %2664 = vst [vmem:[#allocation17] sm:$0xff] %v2663_v10  }
0x1282 PF: > { %s4422_s12 = sld [smem:[#allocation26_spill]]  ;;  %s3432_s1 = smov [#allocation17]  }
0x1283   : > { %s2292_s8 = sshll.u32 %s3432_s1, 4  ;;  %s2293_s8 = int_to_ptr.vmem [resolvable:$true] %s2292_s8 }
0x1284   : > { %s3332_s11 = scalar_lea.vmem %s2293_s8, 128  ;;  %p3339_p7 = scmp.lt.s32.totalorder %s2293_s8, %s2293_s8 }
0x1285   : > { %p3333_p13 = scmp.ne.s32.totalorder %s2293_s8, %s3332_s11  ;;  %p3340_p11 = scmp.lt.s32.totalorder %s3332_s11, %s3332_s11 }
0x1287   : > { %p3341_p1 = por %p3340_p11, %p3339_p7 }
0x1288   : > { %p2928_p3 = scmp.eq.s32.totalorder %s4422_s12, 1 }
0x128a   : > { %p3334_p12 = pnand %p3333_p13, %p2928_p3 }
0x128c   : > { %p3335_p6 = pneg %p3334_p12 }
0x128e   : > { %p3342_p10 = pnand %p3341_p1, %p3335_p6 }
0x1290   : > { %3345 = shalt.err (!%p3342_p10)
}
0x1291   : > { %s4423_s30 = sld [smem:[#allocation51_spill]] }
0x1297   : > { %s4424_s7 = smov %s4423_s30  ;;  %s3346_s0 = scalar_lea.hbm %s4423_s30, 128 }
0x1298   : > { %p3347_p8 = scmp.ne.s32.totalorder %s4424_s7, %s3346_s0  ;;  %p3352_p5 = scmp.lt.u32.totalorder %s3346_s0, %s4424_s7 }
0x129a   : > { %p3348_p0 = pnand %p3347_p8, %p2928_p3 }
0x129c   : > { %p3349_p4 = pneg %p3348_p0 }
0x129e   : > { %p3354_p9 = pnand %p3352_p5, %p3349_p4 }
0x12a0   : > { %3357 = shalt.err (!%p3354_p9)
}
0x12a1   : > { %s3433_s9 = smov 4  }
0x12a2   : > { %2892 = dma.vmem_to_hbm [thread:$0]  (%p2928_p3), %s2293_s8, 128, %s4424_s7, [#allocation5], %s3430_s16, %s3430_s16, %s3433_s9  }
0x12a3   : > { %3395 = dma.done.wait (%p2928_p3), [#allocation5], 128  }
0x12a4   : > { %3397 = vsyncadd (%p2928_p3), [#allocation5], 4294967168 }
0x12a5 PF: > { %s4425_s21 = sld [smem:[#allocation27_spill]]  ;;  %s4426_s0 = sld [smem:[#allocation24_spill]] }
0x12a6   : > { %s4427_s30 = sld [smem:[#allocation25_spill]]  ;;  %s4428_s20 = sld [smem:[#allocation28_spill]] }
0x12ab   : > { %p38_p2 = scmp.ge.s32.totalorder %s4425_s21, 4  }
0x12ad   :  { %40 = sbr.rel (!%p38_p2) target bundleno = 31 (0x1f), region = 229 }
0x12b4   :  { %2308 = vsyncpa [#allocation4], 1 }
0x12b5   :  { %2310 = vsyncpa [#allocation4 + $0x1], 1 }
0x12b6   :  { %2311 = vsyncpa [#allocation7], 1 }
0x12b7   :  { %2312 = vsyncpa [#allocation10], 1 }
0x12b8   :  { %2314 = vsyncpa [#allocation10 + $0x1], 1 }
0x12b9   :  { %2315 = vsyncpa [#allocation13], 1 }
0x12ba   :  { %2317 = vsyncpa [#allocation13 + $0x1], 1 }
0x12bb   :  { %2318 = vsyncpa [#allocation16], 1 }
0x12bc   :  { %2320 = vsyncpa [#allocation16 + $0x1], 1 }
0x12bd   :  { %2321 = vsyncpa [#allocation5], 1 }
0x12be   :  { %2323 = vsyncpa [#allocation5 + $0x1], 1 }

</bundles_post_ra>
